<compile_context>
chip_gen: v7x
topology: tpu7x:2x2x1
jax: 0.10.0
libtpu: 0.0.40
codegen_flags: <defaults>
</compile_context>

<pallas_src>
import numpy as np

import jax
import jax.numpy as jnp
from jax import lax
from jax.experimental import pallas as pl
from jax.experimental.pallas import tpu as pltpu

# ---- hyperparameters implied by the module's __init__ (kept small) ----
MAX_SRC_LEN = 8
MAX_TRG_LEN = 8
ENC_INP_SIZE = 32                     # word embedding dim
ENC_HIDDEN_SIZE = 32                  # encoder output dim
DEC_HIDDEN_SIZE = 32
DEC_INP_SIZE = DEC_HIDDEN_SIZE + ENC_INP_SIZE + ENC_HIDDEN_SIZE   # 96
XH_SIZE = DEC_INP_SIZE + DEC_HIDDEN_SIZE                          # 128
WORD_VOCAB_LEN = 20
CHAR_VOCAB_LEN = 10
DROP_RATE = 0.3                       # inference -> dropout is identity
EOM_FLAG = 0


# --------------------------- fused forward kernel ---------------------------

def _seq2seq_kernel(
    meta_ref,         # SMEM (2,)  int32: [n_steps, NEXT flag]
    pos_ref,          # SMEM (MAX_TRG_LEN,) int32: padded per-step source positions
    embeds_ref,       # (S, E)   word embeddings of the source
    mask_ref,         # (S, 1)   source mask
    w_enc_ref,        # (E, HENC)
    b_enc_ref,        # (1, HENC)
    w_ae_ref,         # (HENC, H)  pointer-attention enc projection (hoisted)
    w_xh_ref,         # (XH=128, 4H=128) fused [W_ih ; W_hh]
    b_lstm_ref,       # (1, 4H)
    w_ah_ref,         # (H, H)
    v_att_ref,        # (1, H)
    w_aa_ref,         # (1, H)   SelfAttention1 scoring vector (att_a)
    w_proj_ref,       # (6H, H)
    b_proj_ref,       # (1, H)
    # outputs (written once, after the decode loop)
    ptr_idx_ref,      # (1, MAX_TRG_LEN) int32   per-step argmax pointer index
    ptr_w_ref,        # (S, MAX_TRG_LEN) float32 per-step pointer softmax (step in lanes)
    h_out_ref,        # (1, H) final decoder hidden state
    c_out_ref,        # (1, H) final decoder cell state
):
    H = DEC_HIDDEN_SIZE
    S = embeds_ref.shape[0]
    M = MAX_TRG_LEN

    # ---------------- prologue: encoder, run once ----------------
    # TODO(synk): original Encoder (char-CNN + bi-LSTM + pos features) is not
    # defined in the source; reduced to a tanh(linear) token encoder.
    embeds = embeds_ref[...]
    enc = jnp.tanh(
        jnp.dot(embeds, w_enc_ref[...], preferred_element_type=jnp.float32)
        + b_enc_ref[...])                                                    # (S, HENC)
    e_proj = jnp.dot(enc, w_ae_ref[...], preferred_element_type=jnp.float32)  # (S, H)

    mask = mask_ref[...]                                                     # (S, 1)
    n_steps = meta_ref[0]
    next_flag = meta_ref[1]

    lane_s = lax.broadcasted_iota(jnp.int32, (1, S), 1)
    rows_m = lax.broadcasted_iota(jnp.int32, (M, 1), 0)
    row_src = lax.broadcasted_iota(jnp.int32, (S, 1), 0).astype(jnp.float32)
    step_lane_i = lax.broadcasted_iota(jnp.int32, (1, MAX_TRG_LEN), 1)
    step_lane_w = lax.broadcasted_iota(jnp.int32, (S, MAX_TRG_LEN), 1)

    def step(t, carry):
        xh, c_prev, men, reps, embs, cnt, idx_buf, w_buf = carry
        is_loop = t > 0

        # this step's word embedding / encoder state, gathered by one-hot matmul
        # (exactly zero for the pre-loop step t == 0 -> psedu_emb / psedu_prev_enc_hid)
        oh = jnp.logical_and(lane_s == pos_ref[t], is_loop).astype(jnp.float32)   # (1, S)
        emb_t = jnp.dot(oh, embeds, preferred_element_type=jnp.float32)           # (1, E)
        enc_t = jnp.dot(oh, enc, preferred_element_type=jnp.float32)              # (1, HENC)

        # prev_dec_hid <- cat(cur_men_rep, emb_t, enc_t) + prev_dec_hid,
        # kept contiguous with h so the LSTM gates are ONE (1,128)@(128,128) dot.
        prev_dec = xh[:, 0:DEC_INP_SIZE] + jnp.concatenate([men, emb_t, enc_t], axis=-1)
        h_prev = xh[:, DEC_INP_SIZE:XH_SIZE]
        # TODO(synk): Decoder internals are not defined in the source; modeled as
        # an LSTMCell over prev_dec_hid followed by pointer attention with query
        # (h + cur_men_rep) over the projected encoder states.
        gates = (jnp.dot(jnp.concatenate([prev_dec, h_prev], axis=-1), w_xh_ref[...],
                         preferred_element_type=jnp.float32)
                 + b_lstm_ref[...])                                               # (1, 4H)
        gi = jax.nn.sigmoid(gates[:, 0 * H:1 * H])
        gf = jax.nn.sigmoid(gates[:, 1 * H:2 * H])
        gg = jnp.tanh(gates[:, 2 * H:3 * H])
        go = jax.nn.sigmoid(gates[:, 3 * H:4 * H])
        c_new = gf * c_prev + gi * gg
        h_new = go * jnp.tanh(c_new)
        xh_new = jnp.concatenate([prev_dec, h_new], axis=-1)                      # (1, 128)

        # pointer attention: s_j = v . tanh(E_proj_j + (h + men) W_h), masked softmax
        q_proj = jnp.dot(h_new + men, w_ah_ref[...], preferred_element_type=jnp.float32)
        tanh_mat = jnp.tanh(e_proj + q_proj)                                      # (S, H)
        scores = jnp.sum(tanh_mat * v_att_ref[...], axis=-1, keepdims=True)       # (S, 1)
        masked = jnp.where(mask > 0, scores, jnp.full_like(scores, -1e9))
        mmax = jnp.max(masked, axis=0, keepdims=True)
        es = jnp.where(mask > 0, jnp.exp(masked - mmax), jnp.zeros_like(masked))
        den = jnp.sum(es, axis=0, keepdims=True)
        den = jnp.where(den > 0, den, jnp.ones_like(den))                         # all-masked guard
        ptr_w = es / den                                                          # exact softmax

        # argmax (first index of the max) over the masked scores
        cand = jnp.where(masked >= mmax, row_src, jnp.full_like(row_src, float(S)))
        idx11 = jnp.min(cand, axis=0, keepdims=True).astype(jnp.int32)            # (1, 1)

        # buffer per-step outputs in the carry; flushed once after the loop
        idx_buf = jnp.where(step_lane_i == t, idx11, idx_buf)
        w_buf = jnp.where(step_lane_w == t, ptr_w, w_buf)

        # ---- mention bookkeeping (no-op for the pre-loop step t == 0) ----
        keep = jnp.logical_and(
            jnp.logical_and(idx11 != EOM_FLAG, idx11 != next_flag), is_loop)      # (1, 1)
        app = jnp.logical_and(keep, rows_m == cnt)                                # (M, 1)
        reps_new = jnp.where(app, h_new, reps)
        embs_new = jnp.where(app, enc_t, embs)
        cnt_new = jnp.where(keep, jnp.minimum(cnt + 1, M), jnp.zeros_like(cnt))
        pool_mask = rows_m < cnt_new

        def pool(buf):
            # SelfAttention1-style masked softmax pooling over the valid rows
            s = jnp.sum(buf * w_aa_ref[...], axis=-1, keepdims=True)              # (M, 1)
            s = jnp.where(pool_mask, s, jnp.full_like(s, -1e9))
            sm = jnp.max(s, axis=0, keepdims=True)
            ee = jnp.where(pool_mask, jnp.exp(s - sm), jnp.zeros_like(s))
            dd = jnp.sum(ee, axis=0, keepdims=True)
            dd = jnp.where(dd > 0, dd, jnp.ones_like(dd))
            return jnp.sum((ee / dd) * buf, axis=0, keepdims=True)                # (1, H)

        last_row = rows_m == (cnt_new - 1)
        first_r = reps_new[0:1, :]
        first_e = embs_new[0:1, :]
        last_r = jnp.sum(jnp.where(last_row, reps_new, jnp.zeros_like(reps_new)),
                         axis=0, keepdims=True)
        last_e = jnp.sum(jnp.where(last_row, embs_new, jnp.zeros_like(embs_new)),
                         axis=0, keepdims=True)

        # lin_projection(cat(reps[0], pool(reps), reps[-1],
        #                    embs[0], pool(embs), embs[-1])) + ReLU (dropout = id)
        # assembled contiguously -> ONE (1,192)@(192,32) dot per step.
        cat6 = jnp.concatenate(
            [first_r, pool(reps_new), last_r, first_e, pool(embs_new), last_e], axis=-1)
        proj = (jnp.dot(cat6, w_proj_ref[...], preferred_element_type=jnp.float32)
                + b_proj_ref[...])
        men_new = jnp.where(keep, jnp.maximum(proj, 0.0), jnp.zeros_like(proj))

        return (xh_new, c_new, men_new, reps_new, embs_new, cnt_new, idx_buf, w_buf)

    carry0 = (
        jnp.zeros((1, XH_SIZE), jnp.float32),        # [prev_dec_hid ; h]
        jnp.zeros((1, H), jnp.float32),              # c
        jnp.zeros((1, H), jnp.float32),              # cur_men_rep
        jnp.zeros((M, H), jnp.float32),              # mention rep buffer
        jnp.zeros((M, H), jnp.float32),              # mention emb buffer
        jnp.zeros((1, 1), jnp.int32),                # mention count
        jnp.zeros((1, MAX_TRG_LEN), jnp.int32),      # per-step argmax buffer
        jnp.zeros((S, MAX_TRG_LEN), jnp.float32),    # per-step pointer softmax buffer
    )
    xh_fin, c_fin, _, _, _, _, idx_buf, w_buf = lax.fori_loop(0, n_steps, step, carry0)

    # single writeback of all outputs (padded steps remain zero)
    ptr_idx_ref[...] = idx_buf
    ptr_w_ref[...] = w_buf
    h_out_ref[...] = xh_fin[:, DEC_INP_SIZE:XH_SIZE]
    c_out_ref[...] = c_fin


def _fused_forward_call(embeds, mask_col, meta, pos_arr, p):
    S = embeds.shape[0]
    H = DEC_HIDDEN_SIZE
    vmem = pl.BlockSpec(memory_space=pltpu.MemorySpace.VMEM)
    smem = pl.BlockSpec(memory_space=pltpu.MemorySpace.SMEM)
    return pl.pallas_call(
        _seq2seq_kernel,
        out_shape=(
            jax.ShapeDtypeStruct((1, MAX_TRG_LEN), jnp.int32),
            jax.ShapeDtypeStruct((S, MAX_TRG_LEN), jnp.float32),
            jax.ShapeDtypeStruct((1, H), jnp.float32),
            jax.ShapeDtypeStruct((1, H), jnp.float32),
        ),
        in_specs=[smem, smem] + [vmem] * 12,
        out_specs=(vmem, vmem, vmem, vmem),
    )(meta, pos_arr, embeds, mask_col,
      p["w_enc"], p["b_enc"], p["w_att_e"],
      p["w_xh"], p["b_lstm"],
      p["w_att_h"], p["v_att"], p["w_att_a"],
      p["w_proj"], p["b_proj"])


# ----------------------------- jitted device forward -----------------------------
# No static arguments -> a single compilation serves every trg_seq / every call.

@jax.jit
def _forward_device(params, word_ids, src_mask_row, meta, pos_arr):
    embeds = jnp.take(params["word_embed"], word_ids, axis=0)            # (S, E)
    mask_col = src_mask_row.astype(jnp.float32)[:, None]                 # (S, 1)
    ptr_idx, ptr_w_t, h_fin, c_fin = _fused_forward_call(
        embeds, mask_col, meta, pos_arr, params)
    # (MAX_TRG_LEN,) argmax indices and (MAX_TRG_LEN, S) pointer distributions
    return ptr_idx[0], jnp.transpose(ptr_w_t), h_fin, c_fin


# ----------------------------- model -----------------------------

class Seq2SeqModelPallas:
    def __init__(self, word_vocab_len, char_vocab_len, word_embed_matrix, key):
        del word_vocab_len, char_vocab_len
        ks = jax.random.split(key, 10)
        s = 0.1
        H = DEC_HIDDEN_SIZE
        w_enc = jax.random.normal(ks[0], (ENC_INP_SIZE, ENC_HIDDEN_SIZE), jnp.float32) * s
        b_enc = jnp.zeros((1, ENC_HIDDEN_SIZE), jnp.float32)
        # Decoder LSTM cell; W_ih / W_hh fused into one (128, 4H) weight tile.
        w_ih = jax.random.normal(ks[1], (DEC_INP_SIZE, 4 * H), jnp.float32) * s
        w_hh = jax.random.normal(ks[2], (H, 4 * H), jnp.float32) * s
        w_xh = jnp.concatenate([w_ih, w_hh], axis=0)
        b_lstm = jnp.zeros((1, 4 * H), jnp.float32)
        # pointer attention
        w_att_e = jax.random.normal(ks[3], (ENC_HIDDEN_SIZE, H), jnp.float32) * s
        w_att_h = jax.random.normal(ks[4], (H, H), jnp.float32) * s
        v_att = jax.random.normal(ks[5], (1, H), jnp.float32) * s
        # SelfAttention1 att_a / att_b (att_b is unused in forward, as in the original)
        w_att_a = jax.random.normal(ks[6], (1, H), jnp.float32) * s
        self.w_att_b_unused = jax.random.normal(ks[7], (1, H), jnp.float32) * s
        # lin_projection: Linear(6H, H) + Dropout(identity) + ReLU
        w_proj = jax.random.normal(ks[8], (6 * H, H), jnp.float32) * s
        b_proj = jnp.zeros((1, H), jnp.float32)
        self.params = dict(
            word_embed=jnp.asarray(word_embed_matrix, jnp.float32),
            w_enc=w_enc, b_enc=b_enc, w_xh=w_xh, b_lstm=b_lstm,
            w_att_e=w_att_e, w_att_h=w_att_h, v_att=v_att, w_att_a=w_att_a,
            w_proj=w_proj, b_proj=b_proj)
        self._last_state = None

    def forward(self, src_words_seq, src_words_seq_len, src_mask, src_char_seq,
                pos_seq, trg_seq, gd_y, is_training=False):
        # TODO(synk): weighted NLLLoss training branch (ignore_index=-1) not
        # implemented; inference path only.
        del src_char_seq, pos_seq, gd_y, is_training
        src_time_steps = int(src_words_seq_len)
        next_flag = src_time_steps - 1

        # The decode schedule is fully determined by trg_seq (the original loop
        # always overwrites cur_enc_time_step from trg_seq).  Extract it, pad it
        # to MAX_TRG_LEN and ship it as plain int32 arrays -> no recompilation.
        positions = []
        k = 1
        while (k < len(trg_seq) and len(positions) < MAX_TRG_LEN - 1
               and int(trg_seq[k]) != next_flag):
            positions.append(int(trg_seq[k]))
            k += 1
        n_steps = 1 + len(positions)

        pos_padded = np.zeros((MAX_TRG_LEN,), dtype=np.int32)
        if positions:
            pos_padded[1:1 + len(positions)] = np.asarray(positions, dtype=np.int32)
        meta = np.asarray([n_steps, next_flag], dtype=np.int32)

        ptr_idx_dev, ptr_w_steps, h_fin, c_fin = _forward_device(
            self.params,
            jnp.asarray(src_words_seq[0]),
            jnp.asarray(src_mask[0]),
            jnp.asarray(meta),
            jnp.asarray(pos_padded))
        ptr_idx_host = [int(v) for v in jax.device_get(ptr_idx_dev)[:n_steps]]  # single sync

        # ---- host-side mention / string assembly (mirrors the PyTorch loop) ----
        ptr_trace = []
        ptr_input_trace = []
        pred_mentions = []
        cur_pred_mention_ = []

        ptr_input_trace.append(-1)
        ptr_index = ptr_idx_host[0]
        last_ptr_index = ptr_index
        ptr_trace.append(ptr_index)
        last_head_time_step = 0
        last_is_NEXT = True
        last_is_EOM = False
        first_NEXT = 1
        last_ptr_non_NEXT_index = 0

        for step in range(1, n_steps):
            cur_enc_time_step = positions[step - 1]
            ptr_input_trace.append(cur_enc_time_step)
            ptr_index = ptr_idx_host[step]
            ptr_trace.append(ptr_index)
            if ptr_index != next_flag:
                if last_is_NEXT:
                    last_head_time_step = cur_enc_time_step
                if next_flag not in ptr_trace:
                    if first_NEXT == 2:
                        last_head_time_step = last_ptr_non_NEXT_index
                if last_is_NEXT or last_is_EOM:
                    cur_pred_mention_.append(cur_enc_time_step)
                else:
                    cur_pred_mention_.append(last_ptr_index)
                if last_is_EOM:
                    cur_pred_mention_.pop(len(cur_pred_mention_) - 1)
                if ptr_index != EOM_FLAG:
                    last_is_EOM = False
                else:
                    last_is_EOM = True
                    pred_mentions.append(','.join(str(item) for item in cur_pred_mention_))
                    cur_pred_mention_ = []
                if first_NEXT == 1:
                    last_ptr_non_NEXT_index = ptr_index
                last_is_NEXT = False
                first_NEXT += 1
            else:
                last_is_EOM = False
                last_is_NEXT = True
            last_ptr_index = ptr_index

        self._last_state = (h_fin, c_fin, ptr_w_steps[n_steps - 1])
        return pred_mentions, ptr_input_trace, ptr_trace


# ----------------------------- main -----------------------------

if __name__ == "__main__":
    key = jax.random.PRNGKey(0)
    k_embed, k_model, k_words = jax.random.split(key, 3)

    word_embed_matrix = jax.random.normal(
        k_embed, (WORD_VOCAB_LEN, ENC_INP_SIZE), jnp.float32) * 0.1
    model = Seq2SeqModelPallas(WORD_VOCAB_LEN, CHAR_VOCAB_LEN, word_embed_matrix, k_model)

    src_words_seq = jax.random.randint(k_words, (1, MAX_SRC_LEN), 0, WORD_VOCAB_LEN)
    src_words_seq_len = MAX_SRC_LEN
    src_mask = jnp.ones((1, MAX_SRC_LEN), jnp.float32)
    src_char_seq = jnp.zeros((1, MAX_SRC_LEN, 4), jnp.int32)       # unused by simplified encoder
    pos_seq = jnp.arange(MAX_SRC_LEN, dtype=jnp.int32)[None, :]    # unused by simplified encoder
    # trg_seq drives the decoding schedule; decoding stops when it hits NEXT_FLAG (= S-1).
    trg_seq = [0, 2, 3, 1, 0, MAX_SRC_LEN - 1, MAX_SRC_LEN - 1, MAX_SRC_LEN - 1]
    gd_y = None  # only used in the (unimplemented) training branch

    pred_mentions, ptr_input_trace, ptr_trace = model.forward(
        src_words_seq, src_words_seq_len, src_mask, src_char_seq, pos_seq,
        trg_seq, gd_y, is_training=False)

    jax.block_until_ready(model._last_state)
    print("KERNEL_OK")
</pallas_src>

<mosaic_0001>
module attributes {stable_mosaic.version = 11 : i64} {
  func.func @_seq2seq_kernel(%arg0: memref<2xi32, #tpu.memory_space<smem>>, %arg1: memref<8xi32, #tpu.memory_space<smem>>, %arg2: memref<8x32xf32, #tpu.memory_space<vmem>>, %arg3: memref<8x1xf32, #tpu.memory_space<vmem>>, %arg4: memref<32x32xf32, #tpu.memory_space<vmem>>, %arg5: memref<1x32xf32, #tpu.memory_space<vmem>>, %arg6: memref<32x32xf32, #tpu.memory_space<vmem>>, %arg7: memref<128x128xf32, #tpu.memory_space<vmem>>, %arg8: memref<1x128xf32, #tpu.memory_space<vmem>>, %arg9: memref<32x32xf32, #tpu.memory_space<vmem>>, %arg10: memref<1x32xf32, #tpu.memory_space<vmem>>, %arg11: memref<1x32xf32, #tpu.memory_space<vmem>>, %arg12: memref<192x32xf32, #tpu.memory_space<vmem>>, %arg13: memref<1x32xf32, #tpu.memory_space<vmem>>, %arg14: memref<1x8xi32, #tpu.memory_space<vmem>>, %arg15: memref<8x8xf32, #tpu.memory_space<vmem>>, %arg16: memref<1x32xf32, #tpu.memory_space<vmem>>, %arg17: memref<1x32xf32, #tpu.memory_space<vmem>>) attributes {dimension_semantics = [], scalar_prefetch = 0 : i64, scratch_operands = 0 : i64, tpu.core_type = #tpu.core_type<tc>} {
    %c0 = arith.constant 0 : index
    %c0_0 = arith.constant 0 : index
    %0 = vector.load %arg2[%c0, %c0_0] : memref<8x32xf32, #tpu.memory_space<vmem>>, vector<8x32xf32>
    %c0_1 = arith.constant 0 : index
    %c0_2 = arith.constant 0 : index
    %1 = vector.load %arg4[%c0_1, %c0_2] : memref<32x32xf32, #tpu.memory_space<vmem>>, vector<32x32xf32>
    %cst = arith.constant dense<0.000000e+00> : vector<8x32xf32>
    %2 = tpu.matmul %0, %1, %cst {dimension_numbers = #tpu.dot_dimension_numbers<[1], [0], [0], [1], [0, 0, 1, 1], [], []>} : vector<8x32xf32>, vector<32x32xf32>, vector<8x32xf32> -> vector<8x32xf32>
    %c0_3 = arith.constant 0 : index
    %c0_4 = arith.constant 0 : index
    %3 = vector.load %arg5[%c0_3, %c0_4] : memref<1x32xf32, #tpu.memory_space<vmem>>, vector<1x32xf32>
    %4 = vector.broadcast %3 : vector<1x32xf32> to vector<8x32xf32>
    %5 = arith.addf %2, %4 : vector<8x32xf32>
    %6 = math.tanh %5 : vector<8x32xf32>
    %c0_5 = arith.constant 0 : index
    %c0_6 = arith.constant 0 : index
    %7 = vector.load %arg6[%c0_5, %c0_6] : memref<32x32xf32, #tpu.memory_space<vmem>>, vector<32x32xf32>
    %cst_7 = arith.constant dense<0.000000e+00> : vector<8x32xf32>
    %8 = tpu.matmul %6, %7, %cst_7 {dimension_numbers = #tpu.dot_dimension_numbers<[1], [0], [0], [1], [0, 0, 1, 1], [], []>} : vector<8x32xf32>, vector<32x32xf32>, vector<8x32xf32> -> vector<8x32xf32>
    %c0_8 = arith.constant 0 : index
    %c0_9 = arith.constant 0 : index
    %9 = vector.load %arg3[%c0_8, %c0_9] : memref<8x1xf32, #tpu.memory_space<vmem>>, vector<8x1xf32>
    %c0_10 = arith.constant 0 : index
    %10 = memref.load %arg0[%c0_10] : memref<2xi32, #tpu.memory_space<smem>>
    %c1 = arith.constant 1 : index
    %11 = memref.load %arg0[%c1] : memref<2xi32, #tpu.memory_space<smem>>
    %12 = tpu.iota {dimensions = array<i32: 1>} : vector<1x8xi32>
    %13 = tpu.iota {dimensions = array<i32: 0>} : vector<8x1xi32>
    %14 = tpu.iota {dimensions = array<i32: 0>} : vector<8x1xi32>
    %15 = arith.sitofp %14 : vector<8x1xi32> to vector<8x1xf32>
    %16 = tpu.iota {dimensions = array<i32: 1>} : vector<1x8xi32>
    %17 = tpu.iota {dimensions = array<i32: 1>} : vector<8x8xi32>
    %cst_11 = arith.constant 0.000000e+00 : f32
    %18 = vector.broadcast %cst_11 : f32 to vector<1x128xf32>
    %cst_12 = arith.constant 0.000000e+00 : f32
    %19 = vector.broadcast %cst_12 : f32 to vector<1x32xf32>
    %cst_13 = arith.constant 0.000000e+00 : f32
    %20 = vector.broadcast %cst_13 : f32 to vector<1x32xf32>
    %cst_14 = arith.constant 0.000000e+00 : f32
    %21 = vector.broadcast %cst_14 : f32 to vector<8x32xf32>
    %cst_15 = arith.constant 0.000000e+00 : f32
    %22 = vector.broadcast %cst_15 : f32 to vector<8x32xf32>
    %c0_i32 = arith.constant 0 : i32
    %23 = vector.broadcast %c0_i32 : i32 to vector<1x1xi32>
    %c0_i32_16 = arith.constant 0 : i32
    %24 = vector.broadcast %c0_i32_16 : i32 to vector<1x8xi32>
    %cst_17 = arith.constant 0.000000e+00 : f32
    %25 = vector.broadcast %cst_17 : f32 to vector<8x8xf32>
    %c0_i32_18 = arith.constant 0 : i32
    %26 = arith.subi %10, %c0_i32_18 : i32
    %27 = arith.addi %c0_i32_18, %26 : i32
    %c1_i32 = arith.constant 1 : i32
    %28:8 = scf.for %arg18 = %c0_i32_18 to %27 step %c1_i32 iter_args(%arg19 = %18, %arg20 = %19, %arg21 = %20, %arg22 = %21, %arg23 = %22, %arg24 = %23, %arg25 = %24, %arg26 = %25) -> (vector<1x128xf32>, vector<1x32xf32>, vector<1x32xf32>, vector<8x32xf32>, vector<8x32xf32>, vector<1x1xi32>, vector<1x8xi32>, vector<8x8xf32>)  : i32 {
      %c0_i32_27 = arith.constant 0 : i32
      %34 = arith.cmpi sgt, %arg18, %c0_i32_27 : i32
      %35 = arith.index_cast %arg18 : i32 to index
      %36 = memref.load %arg1[%35] : memref<8xi32, #tpu.memory_space<smem>>
      %37 = vector.broadcast %36 : i32 to vector<1x8xi32>
      %38 = arith.cmpi eq, %12, %37 : vector<1x8xi32>
      %39 = vector.broadcast %34 : i1 to vector<1x8xi1>
      %40 = arith.andi %38, %39 : vector<1x8xi1>
      %41 = arith.extui %40 : vector<1x8xi1> to vector<1x8xi32>
      %42 = arith.sitofp %41 : vector<1x8xi32> to vector<1x8xf32>
      %cst_28 = arith.constant dense<0.000000e+00> : vector<1x32xf32>
      %43 = tpu.matmul %42, %0, %cst_28 {dimension_numbers = #tpu.dot_dimension_numbers<[1], [0], [0], [1], [0, 0, 1, 1], [], []>} : vector<1x8xf32>, vector<8x32xf32>, vector<1x32xf32> -> vector<1x32xf32>
      %cst_29 = arith.constant dense<0.000000e+00> : vector<1x32xf32>
      %44 = tpu.matmul %42, %6, %cst_29 {dimension_numbers = #tpu.dot_dimension_numbers<[1], [0], [0], [1], [0, 0, 1, 1], [], []>} : vector<1x8xf32>, vector<8x32xf32>, vector<1x32xf32> -> vector<1x32xf32>
      %45 = vector.extract_strided_slice %arg19 {offsets = [0, 0], sizes = [1, 96], strides = [1, 1]} : vector<1x128xf32> to vector<1x96xf32>
      %46 = tpu.concatenate %arg21, %43, %44 in 1 : vector<1x32xf32>, vector<1x32xf32>, vector<1x32xf32> -> vector<1x96xf32>
      %47 = arith.addf %45, %46 : vector<1x96xf32>
      %48 = vector.extract_strided_slice %arg19 {offsets = [0, 96], sizes = [1, 32], strides = [1, 1]} : vector<1x128xf32> to vector<1x32xf32>
      %49 = tpu.concatenate %47, %48 in 1 : vector<1x96xf32>, vector<1x32xf32> -> vector<1x128xf32>
      %c0_30 = arith.constant 0 : index
      %c0_31 = arith.constant 0 : index
      %50 = vector.load %arg7[%c0_30, %c0_31] : memref<128x128xf32, #tpu.memory_space<vmem>>, vector<128x128xf32>
      %cst_32 = arith.constant dense<0.000000e+00> : vector<1x128xf32>
      %51 = tpu.matmul %49, %50, %cst_32 {dimension_numbers = #tpu.dot_dimension_numbers<[1], [0], [0], [1], [0, 0, 1, 1], [], []>} : vector<1x128xf32>, vector<128x128xf32>, vector<1x128xf32> -> vector<1x128xf32>
      %c0_33 = arith.constant 0 : index
      %c0_34 = arith.constant 0 : index
      %52 = vector.load %arg8[%c0_33, %c0_34] : memref<1x128xf32, #tpu.memory_space<vmem>>, vector<1x128xf32>
      %53 = arith.addf %51, %52 : vector<1x128xf32>
      %54 = vector.extract_strided_slice %53 {offsets = [0, 0], sizes = [1, 32], strides = [1, 1]} : vector<1x128xf32> to vector<1x32xf32>
      %55 = arith.negf %54 : vector<1x32xf32>
      %56 = math.exp %55 : vector<1x32xf32>
      %cst_35 = arith.constant 1.000000e+00 : f32
      %57 = vector.broadcast %cst_35 : f32 to vector<1x32xf32>
      %58 = arith.addf %57, %56 : vector<1x32xf32>
      %59 = arith.divf %57, %58 : vector<1x32xf32>
      %60 = vector.extract_strided_slice %53 {offsets = [0, 32], sizes = [1, 32], strides = [1, 1]} : vector<1x128xf32> to vector<1x32xf32>
      %61 = arith.negf %60 : vector<1x32xf32>
      %62 = math.exp %61 : vector<1x32xf32>
      %cst_36 = arith.constant 1.000000e+00 : f32
      %63 = vector.broadcast %cst_36 : f32 to vector<1x32xf32>
      %64 = arith.addf %63, %62 : vector<1x32xf32>
      %65 = arith.divf %63, %64 : vector<1x32xf32>
      %66 = vector.extract_strided_slice %53 {offsets = [0, 64], sizes = [1, 32], strides = [1, 1]} : vector<1x128xf32> to vector<1x32xf32>
      %67 = math.tanh %66 : vector<1x32xf32>
      %68 = vector.extract_strided_slice %53 {offsets = [0, 96], sizes = [1, 32], strides = [1, 1]} : vector<1x128xf32> to vector<1x32xf32>
      %69 = arith.negf %68 : vector<1x32xf32>
      %70 = math.exp %69 : vector<1x32xf32>
      %cst_37 = arith.constant 1.000000e+00 : f32
      %71 = vector.broadcast %cst_37 : f32 to vector<1x32xf32>
      %72 = arith.addf %71, %70 : vector<1x32xf32>
      %73 = arith.divf %71, %72 : vector<1x32xf32>
      %74 = arith.mulf %65, %arg20 : vector<1x32xf32>
      %75 = arith.mulf %59, %67 : vector<1x32xf32>
      %76 = arith.addf %74, %75 : vector<1x32xf32>
      %77 = math.tanh %76 : vector<1x32xf32>
      %78 = arith.mulf %73, %77 : vector<1x32xf32>
      %79 = tpu.concatenate %47, %78 in 1 : vector<1x96xf32>, vector<1x32xf32> -> vector<1x128xf32>
      %80 = arith.addf %78, %arg21 : vector<1x32xf32>
      %c0_38 = arith.constant 0 : index
      %c0_39 = arith.constant 0 : index
      %81 = vector.load %arg9[%c0_38, %c0_39] : memref<32x32xf32, #tpu.memory_space<vmem>>, vector<32x32xf32>
      %cst_40 = arith.constant dense<0.000000e+00> : vector<1x32xf32>
      %82 = tpu.matmul %80, %81, %cst_40 {dimension_numbers = #tpu.dot_dimension_numbers<[1], [0], [0], [1], [0, 0, 1, 1], [], []>} : vector<1x32xf32>, vector<32x32xf32>, vector<1x32xf32> -> vector<1x32xf32>
      %83 = vector.broadcast %82 : vector<1x32xf32> to vector<8x32xf32>
      %84 = arith.addf %8, %83 : vector<8x32xf32>
      %85 = math.tanh %84 : vector<8x32xf32>
      %c0_41 = arith.constant 0 : index
      %c0_42 = arith.constant 0 : index
      %86 = vector.load %arg10[%c0_41, %c0_42] : memref<1x32xf32, #tpu.memory_space<vmem>>, vector<1x32xf32>
      %87 = vector.broadcast %86 : vector<1x32xf32> to vector<8x32xf32>
      %88 = arith.mulf %85, %87 : vector<8x32xf32>
      %cst_43 = arith.constant dense<0.000000e+00> : vector<8xf32>
      %89 = vector.multi_reduction <add>, %88, %cst_43 [1] : vector<8x32xf32> to vector<8xf32>
      %90 = vector.shape_cast %89 : vector<8xf32> to vector<8x1xf32>
      %cst_44 = arith.constant 0.000000e+00 : f32
      %91 = vector.broadcast %cst_44 : f32 to vector<8x1xf32>
      %92 = arith.cmpf ogt, %9, %91 : vector<8x1xf32>
      %cst_45 = arith.constant -1.000000e+09 : f32
      %93 = vector.broadcast %cst_45 : f32 to vector<8x1xf32>
      %94 = arith.select %92, %90, %93 : vector<8x1xi1>, vector<8x1xf32>
      %cst_46 = arith.constant dense<0xFF800000> : vector<1xf32>
      %95 = vector.multi_reduction <maximumf>, %94, %cst_46 [0] : vector<8x1xf32> to vector<1xf32>
      %96 = vector.shape_cast %95 : vector<1xf32> to vector<1x1xf32>
      %cst_47 = arith.constant 0.000000e+00 : f32
      %97 = vector.broadcast %cst_47 : f32 to vector<8x1xf32>
      %98 = arith.cmpf ogt, %9, %97 : vector<8x1xf32>
      %99 = vector.broadcast %96 : vector<1x1xf32> to vector<8x1xf32>
      %100 = arith.subf %94, %99 : vector<8x1xf32>
      %101 = math.exp %100 : vector<8x1xf32>
      %cst_48 = arith.constant 0.000000e+00 : f32
      %102 = vector.broadcast %cst_48 : f32 to vector<8x1xf32>
      %103 = arith.select %98, %101, %102 : vector<8x1xi1>, vector<8x1xf32>
      %cst_49 = arith.constant dense<0.000000e+00> : vector<1xf32>
      %104 = vector.multi_reduction <add>, %103, %cst_49 [0] : vector<8x1xf32> to vector<1xf32>
      %105 = vector.shape_cast %104 : vector<1xf32> to vector<1x1xf32>
      %cst_50 = arith.constant 0.000000e+00 : f32
      %106 = vector.broadcast %cst_50 : f32 to vector<1x1xf32>
      %107 = arith.cmpf ogt, %105, %106 : vector<1x1xf32>
      %cst_51 = arith.constant 1.000000e+00 : f32
      %108 = vector.broadcast %cst_51 : f32 to vector<1x1xf32>
      %109 = arith.select %107, %105, %108 : vector<1x1xi1>, vector<1x1xf32>
      %110 = vector.broadcast %109 : vector<1x1xf32> to vector<8x1xf32>
      %111 = arith.divf %103, %110 : vector<8x1xf32>
      %112 = vector.broadcast %96 : vector<1x1xf32> to vector<8x1xf32>
      %113 = arith.cmpf oge, %94, %112 : vector<8x1xf32>
      %cst_52 = arith.constant 8.000000e+00 : f32
      %114 = vector.broadcast %cst_52 : f32 to vector<8x1xf32>
      %115 = arith.select %113, %15, %114 : vector<8x1xi1>, vector<8x1xf32>
      %cst_53 = arith.constant dense<0x7F800000> : vector<1xf32>
      %116 = vector.multi_reduction <minimumf>, %115, %cst_53 [0] : vector<8x1xf32> to vector<1xf32>
      %117 = vector.shape_cast %116 : vector<1xf32> to vector<1x1xf32>
      %118 = arith.fptosi %117 : vector<1x1xf32> to vector<1x1xi32>
      %119 = vector.broadcast %arg18 : i32 to vector<1x8xi32>
      %120 = arith.cmpi eq, %16, %119 : vector<1x8xi32>
      %121 = vector.shape_cast %118 : vector<1x1xi32> to vector<1x1xi32>
      %122 = vector.broadcast %121 : vector<1x1xi32> to vector<1x8xi32>
      %123 = arith.select %120, %122, %arg25 : vector<1x8xi1>, vector<1x8xi32>
      %124 = vector.broadcast %arg18 : i32 to vector<8x8xi32>
      %125 = arith.cmpi eq, %17, %124 : vector<8x8xi32>
      %126 = vector.shape_cast %111 : vector<8x1xf32> to vector<8x1xf32>
      %127 = vector.broadcast %126 : vector<8x1xf32> to vector<8x8xf32>
      %128 = arith.select %125, %127, %arg26 : vector<8x8xi1>, vector<8x8xf32>
      %c0_i32_54 = arith.constant 0 : i32
      %129 = vector.broadcast %c0_i32_54 : i32 to vector<1x1xi32>
      %130 = arith.cmpi ne, %118, %129 : vector<1x1xi32>
      %131 = vector.broadcast %11 : i32 to vector<1x1xi32>
      %132 = arith.cmpi ne, %118, %131 : vector<1x1xi32>
      %133 = arith.andi %130, %132 : vector<1x1xi1>
      %134 = vector.broadcast %34 : i1 to vector<1x1xi1>
      %135 = arith.andi %133, %134 : vector<1x1xi1>
      %136 = vector.broadcast %arg24 : vector<1x1xi32> to vector<8x1xi32>
      %137 = arith.cmpi eq, %13, %136 : vector<8x1xi32>
      %138 = vector.broadcast %135 : vector<1x1xi1> to vector<8x1xi1>
      %139 = arith.andi %138, %137 : vector<8x1xi1>
      %140 = vector.shape_cast %139 : vector<8x1xi1> to vector<8x1xi1>
      %141 = vector.broadcast %140 : vector<8x1xi1> to vector<8x32xi1>
      %142 = vector.shape_cast %78 : vector<1x32xf32> to vector<1x32xf32>
      %143 = vector.broadcast %142 : vector<1x32xf32> to vector<8x32xf32>
      %144 = arith.select %141, %143, %arg22 : vector<8x32xi1>, vector<8x32xf32>
      %145 = vector.shape_cast %139 : vector<8x1xi1> to vector<8x1xi1>
      %146 = vector.broadcast %145 : vector<8x1xi1> to vector<8x32xi1>
      %147 = vector.shape_cast %44 : vector<1x32xf32> to vector<1x32xf32>
      %148 = vector.broadcast %147 : vector<1x32xf32> to vector<8x32xf32>
      %149 = arith.select %146, %148, %arg23 : vector<8x32xi1>, vector<8x32xf32>
      %c1_i32_55 = arith.constant 1 : i32
      %150 = vector.broadcast %c1_i32_55 : i32 to vector<1x1xi32>
      %151 = arith.addi %arg24, %150 : vector<1x1xi32>
      %c8_i32 = arith.constant 8 : i32
      %152 = vector.broadcast %c8_i32 : i32 to vector<1x1xi32>
      %153 = arith.minsi %151, %152 : vector<1x1xi32>
      %c0_i32_56 = arith.constant 0 : i32
      %154 = vector.broadcast %c0_i32_56 : i32 to vector<1x1xi32>
      %155 = arith.select %135, %153, %154 : vector<1x1xi1>, vector<1x1xi32>
      %156 = vector.broadcast %155 : vector<1x1xi32> to vector<8x1xi32>
      %157 = arith.cmpi slt, %13, %156 : vector<8x1xi32>
      %c1_i32_57 = arith.constant 1 : i32
      %158 = vector.broadcast %c1_i32_57 : i32 to vector<1x1xi32>
      %159 = arith.subi %155, %158 : vector<1x1xi32>
      %160 = vector.broadcast %159 : vector<1x1xi32> to vector<8x1xi32>
      %161 = arith.cmpi eq, %13, %160 : vector<8x1xi32>
      %162 = vector.extract_strided_slice %144 {offsets = [0, 0], sizes = [1, 32], strides = [1, 1]} : vector<8x32xf32> to vector<1x32xf32>
      %163 = vector.extract_strided_slice %149 {offsets = [0, 0], sizes = [1, 32], strides = [1, 1]} : vector<8x32xf32> to vector<1x32xf32>
      %cst_58 = arith.constant 0.000000e+00 : f32
      %164 = vector.broadcast %cst_58 : f32 to vector<8x32xf32>
      %165 = vector.shape_cast %161 : vector<8x1xi1> to vector<8x1xi1>
      %166 = vector.broadcast %165 : vector<8x1xi1> to vector<8x32xi1>
      %167 = arith.select %166, %144, %164 : vector<8x32xi1>, vector<8x32xf32>
      %cst_59 = arith.constant dense<0.000000e+00> : vector<32xf32>
      %168 = vector.multi_reduction <add>, %167, %cst_59 [0] : vector<8x32xf32> to vector<32xf32>
      %169 = vector.shape_cast %168 : vector<32xf32> to vector<1x32xf32>
      %cst_60 = arith.constant 0.000000e+00 : f32
      %170 = vector.broadcast %cst_60 : f32 to vector<8x32xf32>
      %171 = vector.shape_cast %161 : vector<8x1xi1> to vector<8x1xi1>
      %172 = vector.broadcast %171 : vector<8x1xi1> to vector<8x32xi1>
      %173 = arith.select %172, %149, %170 : vector<8x32xi1>, vector<8x32xf32>
      %cst_61 = arith.constant dense<0.000000e+00> : vector<32xf32>
      %174 = vector.multi_reduction <add>, %173, %cst_61 [0] : vector<8x32xf32> to vector<32xf32>
      %175 = vector.shape_cast %174 : vector<32xf32> to vector<1x32xf32>
      %c0_62 = arith.constant 0 : index
      %c0_63 = arith.constant 0 : index
      %176 = vector.load %arg11[%c0_62, %c0_63] : memref<1x32xf32, #tpu.memory_space<vmem>>, vector<1x32xf32>
      %177 = vector.broadcast %176 : vector<1x32xf32> to vector<8x32xf32>
      %178 = arith.mulf %144, %177 : vector<8x32xf32>
      %cst_64 = arith.constant dense<0.000000e+00> : vector<8xf32>
      %179 = vector.multi_reduction <add>, %178, %cst_64 [1] : vector<8x32xf32> to vector<8xf32>
      %180 = vector.shape_cast %179 : vector<8xf32> to vector<8x1xf32>
      %cst_65 = arith.constant -1.000000e+09 : f32
      %181 = vector.broadcast %cst_65 : f32 to vector<8x1xf32>
      %182 = arith.select %157, %180, %181 : vector<8x1xi1>, vector<8x1xf32>
      %cst_66 = arith.constant dense<0xFF800000> : vector<1xf32>
      %183 = vector.multi_reduction <maximumf>, %182, %cst_66 [0] : vector<8x1xf32> to vector<1xf32>
      %184 = vector.shape_cast %183 : vector<1xf32> to vector<1x1xf32>
      %185 = vector.broadcast %184 : vector<1x1xf32> to vector<8x1xf32>
      %186 = arith.subf %182, %185 : vector<8x1xf32>
      %187 = math.exp %186 : vector<8x1xf32>
      %cst_67 = arith.constant 0.000000e+00 : f32
      %188 = vector.broadcast %cst_67 : f32 to vector<8x1xf32>
      %189 = arith.select %157, %187, %188 : vector<8x1xi1>, vector<8x1xf32>
      %cst_68 = arith.constant dense<0.000000e+00> : vector<1xf32>
      %190 = vector.multi_reduction <add>, %189, %cst_68 [0] : vector<8x1xf32> to vector<1xf32>
      %191 = vector.shape_cast %190 : vector<1xf32> to vector<1x1xf32>
      %cst_69 = arith.constant 0.000000e+00 : f32
      %192 = vector.broadcast %cst_69 : f32 to vector<1x1xf32>
      %193 = arith.cmpf ogt, %191, %192 : vector<1x1xf32>
      %cst_70 = arith.constant 1.000000e+00 : f32
      %194 = vector.broadcast %cst_70 : f32 to vector<1x1xf32>
      %195 = arith.select %193, %191, %194 : vector<1x1xi1>, vector<1x1xf32>
      %196 = vector.broadcast %195 : vector<1x1xf32> to vector<8x1xf32>
      %197 = arith.divf %189, %196 : vector<8x1xf32>
      %198 = vector.broadcast %197 : vector<8x1xf32> to vector<8x32xf32>
      %199 = arith.mulf %198, %144 : vector<8x32xf32>
      %cst_71 = arith.constant dense<0.000000e+00> : vector<32xf32>
      %200 = vector.multi_reduction <add>, %199, %cst_71 [0] : vector<8x32xf32> to vector<32xf32>
      %201 = vector.shape_cast %200 : vector<32xf32> to vector<1x32xf32>
      %c0_72 = arith.constant 0 : index
      %c0_73 = arith.constant 0 : index
      %202 = vector.load %arg11[%c0_72, %c0_73] : memref<1x32xf32, #tpu.memory_space<vmem>>, vector<1x32xf32>
      %203 = vector.broadcast %202 : vector<1x32xf32> to vector<8x32xf32>
      %204 = arith.mulf %149, %203 : vector<8x32xf32>
      %cst_74 = arith.constant dense<0.000000e+00> : vector<8xf32>
      %205 = vector.multi_reduction <add>, %204, %cst_74 [1] : vector<8x32xf32> to vector<8xf32>
      %206 = vector.shape_cast %205 : vector<8xf32> to vector<8x1xf32>
      %cst_75 = arith.constant -1.000000e+09 : f32
      %207 = vector.broadcast %cst_75 : f32 to vector<8x1xf32>
      %208 = arith.select %157, %206, %207 : vector<8x1xi1>, vector<8x1xf32>
      %cst_76 = arith.constant dense<0xFF800000> : vector<1xf32>
      %209 = vector.multi_reduction <maximumf>, %208, %cst_76 [0] : vector<8x1xf32> to vector<1xf32>
      %210 = vector.shape_cast %209 : vector<1xf32> to vector<1x1xf32>
      %211 = vector.broadcast %210 : vector<1x1xf32> to vector<8x1xf32>
      %212 = arith.subf %208, %211 : vector<8x1xf32>
      %213 = math.exp %212 : vector<8x1xf32>
      %cst_77 = arith.constant 0.000000e+00 : f32
      %214 = vector.broadcast %cst_77 : f32 to vector<8x1xf32>
      %215 = arith.select %157, %213, %214 : vector<8x1xi1>, vector<8x1xf32>
      %cst_78 = arith.constant dense<0.000000e+00> : vector<1xf32>
      %216 = vector.multi_reduction <add>, %215, %cst_78 [0] : vector<8x1xf32> to vector<1xf32>
      %217 = vector.shape_cast %216 : vector<1xf32> to vector<1x1xf32>
      %cst_79 = arith.constant 0.000000e+00 : f32
      %218 = vector.broadcast %cst_79 : f32 to vector<1x1xf32>
      %219 = arith.cmpf ogt, %217, %218 : vector<1x1xf32>
      %cst_80 = arith.constant 1.000000e+00 : f32
      %220 = vector.broadcast %cst_80 : f32 to vector<1x1xf32>
      %221 = arith.select %219, %217, %220 : vector<1x1xi1>, vector<1x1xf32>
      %222 = vector.broadcast %221 : vector<1x1xf32> to vector<8x1xf32>
      %223 = arith.divf %215, %222 : vector<8x1xf32>
      %224 = vector.broadcast %223 : vector<8x1xf32> to vector<8x32xf32>
      %225 = arith.mulf %224, %149 : vector<8x32xf32>
      %cst_81 = arith.constant dense<0.000000e+00> : vector<32xf32>
      %226 = vector.multi_reduction <add>, %225, %cst_81 [0] : vector<8x32xf32> to vector<32xf32>
      %227 = vector.shape_cast %226 : vector<32xf32> to vector<1x32xf32>
      %228 = tpu.concatenate %162, %201, %169, %163, %227, %175 in 1 : vector<1x32xf32>, vector<1x32xf32>, vector<1x32xf32>, vector<1x32xf32>, vector<1x32xf32>, vector<1x32xf32> -> vector<1x192xf32>
      %c0_82 = arith.constant 0 : index
      %c0_83 = arith.constant 0 : index
      %229 = vector.load %arg12[%c0_82, %c0_83] : memref<192x32xf32, #tpu.memory_space<vmem>>, vector<192x32xf32>
      %cst_84 = arith.constant dense<0.000000e+00> : vector<1x32xf32>
      %230 = tpu.matmul %228, %229, %cst_84 {dimension_numbers = #tpu.dot_dimension_numbers<[1], [0], [0], [1], [0, 0, 1, 1], [], []>} : vector<1x192xf32>, vector<192x32xf32>, vector<1x32xf32> -> vector<1x32xf32>
      %c0_85 = arith.constant 0 : index
      %c0_86 = arith.constant 0 : index
      %231 = vector.load %arg13[%c0_85, %c0_86] : memref<1x32xf32, #tpu.memory_space<vmem>>, vector<1x32xf32>
      %232 = arith.addf %230, %231 : vector<1x32xf32>
      %cst_87 = arith.constant 0.000000e+00 : f32
      %233 = vector.broadcast %cst_87 : f32 to vector<1x32xf32>
      %234 = arith.maximumf %232, %233 : vector<1x32xf32>
      %cst_88 = arith.constant 0.000000e+00 : f32
      %235 = vector.broadcast %cst_88 : f32 to vector<1x32xf32>
      %236 = vector.shape_cast %135 : vector<1x1xi1> to vector<1x1xi1>
      %237 = vector.broadcast %236 : vector<1x1xi1> to vector<1x32xi1>
      %238 = arith.select %237, %234, %235 : vector<1x32xi1>, vector<1x32xf32>
      scf.yield %79, %76, %238, %144, %149, %155, %123, %128 : vector<1x128xf32>, vector<1x32xf32>, vector<1x32xf32>, vector<8x32xf32>, vector<8x32xf32>, vector<1x1xi32>, vector<1x8xi32>, vector<8x8xf32>
    }
    %c0_19 = arith.constant 0 : index
    %c0_20 = arith.constant 0 : index
    %29 = vector.load %arg14[%c0_19, %c0_20] : memref<1x8xi32, #tpu.memory_space<vmem>>, vector<1x8xi32>
    tpu.vector_store %arg14[%c0_19, %c0_20], %28#6 {strides = array<i32>} : memref<1x8xi32, #tpu.memory_space<vmem>>, vector<1x8xi32>,
    %c0_21 = arith.constant 0 : index
    %c0_22 = arith.constant 0 : index
    %30 = vector.load %arg15[%c0_21, %c0_22] : memref<8x8xf32, #tpu.memory_space<vmem>>, vector<8x8xf32>
    tpu.vector_store %arg15[%c0_21, %c0_22], %28#7 {strides = array<i32>} : memref<8x8xf32, #tpu.memory_space<vmem>>, vector<8x8xf32>,
    %31 = vector.extract_strided_slice %28#0 {offsets = [0, 96], sizes = [1, 32], strides = [1, 1]} : vector<1x128xf32> to vector<1x32xf32>
    %c0_23 = arith.constant 0 : index
    %c0_24 = arith.constant 0 : index
    %32 = vector.load %arg16[%c0_23, %c0_24] : memref<1x32xf32, #tpu.memory_space<vmem>>, vector<1x32xf32>
    tpu.vector_store %arg16[%c0_23, %c0_24], %31 {strides = array<i32>} : memref<1x32xf32, #tpu.memory_space<vmem>>, vector<1x32xf32>,
    %c0_25 = arith.constant 0 : index
    %c0_26 = arith.constant 0 : index
    %33 = vector.load %arg17[%c0_25, %c0_26] : memref<1x32xf32, #tpu.memory_space<vmem>>, vector<1x32xf32>
    tpu.vector_store %arg17[%c0_25, %c0_26], %28#1 {strides = array<i32>} : memref<1x32xf32, #tpu.memory_space<vmem>>, vector<1x32xf32>,
    return
  }
}

</mosaic_0001>

<bundles_post_ra>
// kernel: _forward_device.1
= control target key start
LH: loop header
LB: loop body
LE: loop exit
PB: predicated region body
PF: predicated region fallthrough
CT: control target
= control target key end

     0   :  { %s2274_s0 = inlined_call_operand.vmem [shape: s32[2], index: 0, kind: input, shape index: {}]   ;;  %s2275_s1 = inlined_call_operand.vmem [shape: s32[8], index: 1, kind: input, shape index: {}]   ;;  %s2276_s2 = inlined_call_operand.vmem [shape: f32[8,32], index: 2, kind: input, shape index: {}]   ;;  %s2277_s3 = inlined_call_operand.vmem [shape: f32[8,1], index: 3, kind: input, shape index: {}]   ;;  %s2278_s4 = inlined_call_operand.vmem [shape: f32[32,32], index: 4, kind: input, shape index: {}]   ;;  %s2279_s5 = inlined_call_operand.vmem [shape: f32[1,32], index: 5, kind: input, shape index: {}]   ;;  %s2280_s6 = inlined_call_operand.vmem [shape: f32[32,32], index: 6, kind: input, shape index: {}]   ;;  %s2281_s7 = inlined_call_operand.vmem [shape: f32[128,128], index: 7, kind: input, shape index: {}]   ;;  %s2282_s8 = inlined_call_operand.vmem [shape: f32[1,128], index: 8, kind: input, shape index: {}]   ;;  %s2283_s9 = inlined_call_operand.vmem [shape: f32[32,32], index: 9, kind: input, shape index: {}]   ;;  %s2284_s10 = inlined_call_operand.vmem [shape: f32[1,32], index: 10, kind: input, shape index: {}]   ;;  %s2285_s11 = inlined_call_operand.vmem [shape: f32[1,32], index: 11, kind: input, shape index: {}]   ;;  %s2286_s12 = inlined_call_operand.vmem [shape: f32[192,32], index: 12, kind: input, shape index: {}]   ;;  %s2287_s13 = inlined_call_operand.vmem [shape: f32[1,32], index: 13, kind: input, shape index: {}]   ;;  %s2288_s14 = inlined_call_operand.hbm [shape: s32[1,8], index: 14, kind: output, shape index: {0}]   ;;  %s2289_s15 = inlined_call_operand.vmem [shape: f32[8,8], index: 15, kind: output, shape index: {1}]   ;;  %s2290_s16 = inlined_call_operand.hbm [shape: f32[1,32], index: 16, kind: output, shape index: {2}]   ;;  %s2291_s17 = inlined_call_operand.hbm [shape: f32[1,32], index: 17, kind: output, shape index: {3}]  }
   0x1   :  { %2292 = sst [smem:[#allocation15_spill]] %s2274_s0 }
   0x2   :  { %2293 = sst [smem:[#allocation16_spill]] %s2275_s1 }
   0x3   :  { %23 = vsyncpa [#allocation4], 0 }
   0x4   :  { %24 = vsyncpa [#allocation6], 0 }
   0x5   :  { %25 = vsyncpa [#allocation3], 0 }
   0x6   :  { %26 = vsyncpa [#allocation9], 0  ;;  %s2294_s26 = sld [smem:[#allocation15_spill]]  ;;  %s2295_s0 = sld [smem:[#allocation16_spill]] }
   0xc   :  { %s33_s27 = sshll.u32 %s2294_s26, 4  ;;  %s43_s30 = sshll.u32 %s2295_s0, 4  ;;  %s34_s27 = int_to_ptr.vmem [resolvable:$true] %s33_s27  ;;  %s44_s30 = int_to_ptr.vmem [resolvable:$true] %s43_s30 }
   0xd   :  { %s1417_s18 = scalar_lea.vmem %s34_s27, 16  ;;  %p1422_p1 = scmp.lt.s32.totalorder %s34_s27, %s34_s27 }
   0xe   :  { %p1418_p0 = scmp.ne.s32.totalorder %s34_s27, %s1417_s18  ;;  %p1423_p2 = scmp.lt.s32.totalorder %s1417_s18, %s1417_s18 }
  0x10   :  { %p1424_p3 = por %p1423_p2, %p1422_p1 }
  0x12   :  { %p1425_p4 = pnand %p1424_p3, %p1418_p0 }
  0x14   :  { %1428 = shalt.err (!%p1425_p4)
}
  0x15   :  { %s1619_s19 = smov [#allocation2]   ;;  %s1429_s1 = scalar_lea.vmem %s44_s30, 16 }
  0x16   :  { %36 = dma.vmem_to_smem %s34_s27, 16, %s1619_s19, [#allocation4]  }
  0x17   :  { %p1430_p5 = scmp.ne.s32.totalorder %s44_s30, %s1429_s1  ;;  %p1434_p6 = scmp.lt.s32.totalorder %s44_s30, %s44_s30 }
  0x18   :  { %p1435_p7 = scmp.lt.s32.totalorder %s1429_s1, %s1429_s1 }
  0x1a   :  { %p1436_p8 = por %p1435_p7, %p1434_p6 }
  0x1c   :  { %p1437_p9 = pnand %p1436_p8, %p1430_p5 }
  0x1e   :  { %1440 = shalt.err (!%p1437_p9)
}
  0x1f   :  { %s1620_s20 = smov [#allocation5]  }
  0x20   :  { %46 = dma.vmem_to_smem %s44_s30, 16, %s1620_s20, [#allocation6]  }
  0x21   :  { %1559 = dma.done.wait [#allocation4], 16  }
  0x22   :  { %1560 = vsyncadd [#allocation4], 4294967280 }
  0x23   :  { %1561 = dma.done.wait [#allocation6], 16  }
  0x24   :  { %1562 = vsyncadd [#allocation6], 4294967280 }
  0x25   :  { %77 = sfence }
  0x26   :  { %v79_v0 = vld [vmem:[%s2278_s4] sm:$0xff]  ;;  %v80_v1 = vld [vmem:[%s2278_s4 + $0x8] sm:$0xff]  ;;  %v81_v2 = vld [vmem:[%s2278_s4 + $0x10] sm:$0xff]  ;;  %v1621_v3 = vmov 0.0|0.0   ;;  %vm1622_vm0 = vmmov 0   ;;  %v1623_v6 = vmov 0.0   ;;  %v172_v9 = vlaneseq }
  0x27   :  { %1185 = vmatprep.subr.bf16.mxu0 %v1621_v3  ;;  %v1186_v4 = vpack.c.bf16 %v80_v1, %v79_v0  ;;  %v82_v5 = vld [vmem:[%s2278_s4 + $0x18] sm:$0xff]  ;;  %1115 = vmatprep.mubr.msk.f32.mxu0 %vm1622_vm0, %v1623_v6  ;;  %v1747_v8 = vld [vmem:[%s2276_s2] sm:$0xff]  ;;  %vm90_vm1 = vcmask 261120   ;;  %v1761_v12 = vld [vmem:[%s2280_s6 + $0x8] sm:$0xff]  ;;  %s1768_s20 = sld [smem:[#allocation2]]  ;;  %s1783_s25 = sld [smem:[#allocation2 + $0x1]] }
  0x28   :  { %v1189_v7 = vpack.c.bf16 %v82_v5, %v81_v2  ;;  %v1751_v10 = vshrl.u32 %v172_v9, 7  ;;  %v1756_v11 = vld [vmem:[%s2280_s6] sm:$0xff]  ;;  %v1766_v13 = vld [vmem:[%s2280_s6 + $0x10] sm:$0xff]  ;;  %v1770_v14 = vand.u32 127, %v172_v9  ;;  %v1776_v16 = vld [vmem:[%s2280_s6 + $0x18] sm:$0xff]  ;;  %v1791_v23 = vmov 0.0  }
  0x29   :  { %1187 = vmatpush3.bf16.msra.mxu0 %v1186_v4  ;;  %v1781_v17 = vld [vmem:[%s2277_s3] sm:$0xff]  ;;  %v1793_v24 = vmov 0   ;;  %v1795_v25 = vmov 0.0   ;;  %v1797_v26 = vmov 0.0  }
  0x2a   :  { %1188 = vmatprep.subr.bf16.mxu0 %v1621_v3  ;;  %v176_v15 = vcvt.s32.f32 %v1751_v10  ;;  %v1057_v18 = vld [vmem:[%s2279_s5] ss:$0 sm:$0xff] }
  0x2d   :  { %1190 = vmatpush3.bf16.msra.mxu0 %v1189_v7  ;;  %p1060_p10 = scmp.le.s32.totalorder %s1768_s20, 0 }
  0x2e   :  { %v1799_v27 = vmov (!%p1060_p10), 0.0   ;;  %v1801_v28 = vmov (!%p1060_p10), 0   ;;  %v1803_v29 = vmov (!%p1060_p10), 0   ;;  %v1805_v30 = vmov (!%p1060_p10), 0.0   ;;  %s1815_s3 = smov (!%p1060_p10), 0  }
  0x2f   :  { %v1807_v31 = vmov (!%p1060_p10), 0.0   ;;  %v1809_v32 = vmov (!%p1060_p10), 0.0   ;;  %v1811_v33 = vmov (!%p1060_p10), 0.0   ;;  %v1813_v34 = vmov (!%p1060_p10), 0.0  }
  0x30   :  { %1116 = vmatmul.mubr.msk.f32.vlgmr.msra.gmra.mrb[0].mxu0 %vm90_vm1, %v1747_v8 }
 0x103   :  { %v160_v19 = vpop.f32.mrb[0].mxu0 }
 0x104   :  { %v161_v20 = vadd.f32 %v1057_v18, %v160_v19  ;;  %v1117_v21 = vpop.f32.mrb[1].mxu0 }
 0x106   :  { %1386 = vtanh.f32 %v161_v20 }
 0x10a   :  { %1038 = sbr.rel (%p1060_p10) target bundleno = 2672 (0xa70), region = 109 }
 0x110   :  { %v1788_v22 = vpop.eup %1386 }
 0x111 LB: > { %v1624_v35 = vmov 0.0   ;;  %vm1625_vm2 = vmmov 0   ;;  %p191_p11 = scmp.gt.s32.totalorder %s1601_s3, 0  ;;  %s192_s5 = sld [smem:[#allocation5 + %s1601_s3]]  ;;  %vm201_vm5 = vcmask 64512   ;;  %v359_v40 = vld [vmem:[%s2281_s7] sm:$0xff]  ;;  %vm696_vm15 = vcmp.eq.s32.totalorder %v1751_v10, %v1577_v29  ;;  %s1601_s3 = sphi %s1815_s3, %s180_s3   ;;  %v1597_v34 = vphi %v1813_v34, %v2308_v34   ;;  %v1593_v33 = vphi %v1811_v33, %v2307_v33   ;;  %v1589_v32 = vphi %v1809_v32, %v965_v32   ;;  %v1585_v31 = vphi %v1807_v31, %v2034_v31   ;;  %v1581_v30 = vphi %v1805_v30, %v2030_v30   ;;  %v1577_v29 = vphi %v1803_v29, %v2018_v29   ;;  %v1573_v28 = vphi %v1801_v28, %v2306_v28   ;;  %v1569_v27 = vphi %v1799_v27, %v2305_v27  }
 0x112   : > { %1118 = vmatprep.subr.mxu0 %v1624_v35  ;;  %1120 = vmatprep.mubr.msk.f32.mxu0 %vm1625_vm2, %v1624_v35  ;;  %v360_v41 = vld [vmem:[%s2281_s7 + $0x8] sm:$0xff]  ;;  %v361_v42 = vld [vmem:[%s2281_s7 + $0x10] sm:$0xff]  ;;  %v1626_v43 = vmov 0.0|0.0   ;;  %v362_v45 = vld [vmem:[%s2281_s7 + $0x18] sm:$0xff]  ;;  %vm354_vm7 = vcmask 523264   ;;  %vm357_vm8 = vcmask 785408  }
 0x113   : > { %1119 = vmatpush3.msra.mxu0 %v1747_v8  ;;  %1123 = vmatprep.subr.mxu1 %v1624_v35  ;;  %s195_s6 = scalar_select %p191_p11, 1, 0  ;;  %v1192_v44 = vpack.c.bf16 %v360_v41, %v359_v40  ;;  %v1195_v46 = vpack.c.bf16 %v362_v45, %v361_v42  ;;  %v363_v47 = vld [vmem:[%s2281_s7 + $0x20] sm:$0xff]  ;;  %v364_v48 = vld [vmem:[%s2281_s7 + $0x28] sm:$0xff]  ;;  %v365_v50 = vld [vmem:[%s2281_s7 + $0x30] sm:$0xff]  ;;  %vm644_vm9 = vcmp.gt.f32.partialorder %v1781_v17, 0.0 }
 0x114   : > { %1124 = vmatpush3.msra.mxu1 %v1788_v22  ;;  %1125 = vmatprep.mubr.msk.f32.mxu1 %vm1625_vm2, %v1624_v35  ;;  %v1198_v49 = vpack.c.bf16 %v364_v48, %v363_v47  ;;  %v366_v51 = vld [vmem:[%s2281_s7 + $0x38] sm:$0xff]  ;;  %v367_v53 = vld [vmem:[%s2281_s7 + $0x40] sm:$0xff]  ;;  %v368_v54 = vld [vmem:[%s2281_s7 + $0x48] sm:$0xff]  ;;  %s1629_s0 = smov 96   ;;  %vm646_vm10 = vcmask 7168  }
 0x115   : > { %v196_v36 = vstv %s195_s6  ;;  %1191 = vmatprep.subr.bf16.mxu0 %v1626_v43  ;;  %1227 = vmatprep.subr.bf16.mxu1 %v1626_v43  ;;  %v1201_v52 = vpack.c.bf16 %v366_v51, %v365_v50  ;;  %v1204_v55 = vpack.c.bf16 %v368_v54, %v367_v53  ;;  %v369_v56 = vld [vmem:[%s2281_s7 + $0x50] sm:$0xff]  ;;  %v370_v57 = vld [vmem:[%s2281_s7 + $0x58] sm:$0xff]  ;;  %v371_v59 = vld [vmem:[%s2281_s7 + $0x60] sm:$0xff]  ;;  %s1628_s6 = smov 64  }
 0x116   : > { %vm1854_vm3 = vcmp.eq.s32.totalorder %v196_v36, 1  ;;  %v1207_v58 = vpack.c.bf16 %v370_v57, %v369_v56  ;;  %v372_v60 = vld [vmem:[%s2281_s7 + $0x68] sm:$0xff]  ;;  %v373_v62 = vld [vmem:[%s2281_s7 + $0x70] sm:$0xff]  ;;  %v374_v63 = vld [vmem:[%s2281_s7 + $0x78] sm:$0xff]  ;;  %v1225_v57 = vpack.c.bf16 %v1776_v16, %v1766_v13 }
 0x117   : > { %v193_v38 = vstv %s192_s5  ;;  %v1210_v61 = vpack.c.bf16 %v372_v60, %v371_v59  ;;  %v1213_v0 = vpack.c.bf16 %v374_v63, %v373_v62  ;;  %s1627_s5 = smov 32   ;;  %v375_v20 = vld [vmem:[%s2282_s8] sm:$0x1]  ;;  %v478_v47 = vld [vmem:[%s2283_s9 + $0x10] sm:$0xff]  ;;  %v479_v48 = vld [vmem:[%s2283_s9 + $0x18] sm:$0xff]  ;;  %v1980_v60 = vsub.s32 0, %v1751_v10 }
 0x118   : > { %vm194_vm4 = vcmp.eq.s32.totalorder %v1770_v14, %v193_v38  ;;  %v476_v45 = vld [vmem:[%s2283_s9] sm:$0xff] }
 0x119   : > { %vm198_vm6 = vmand %vm194_vm4, %vm1854_vm3 }
 0x11a   : > { %v1061_v39 = vsel %vm198_vm6, 1.0, %v1624_v35 }
 0x11b   : > { %1121 = vmatmul.mubr.msk.f32.vlgmr.msra.gmra.mrb[0].mxu0 %vm201_vm5, %v1061_v39  ;;  %1126 = vmatmul.mubr.msk.f32.vlgmr.msra.gmra.mrb[0].mxu1 %vm201_vm5, %v1061_v39 }
 0x11c   : > { %1160 = vmatprep.mubr.msk.f32.mxu0 %vm1625_vm2, %v1624_v35  ;;  %1193 = vmatpush3.bf16.msra.mxu0 %v1192_v44 }
 0x11d   : > { %1194 = vmatprep.subr.bf16.mxu0 %v1626_v43 }
 0x120   : > { %1196 = vmatpush3.bf16.msra.mxu0 %v1195_v46  ;;  %v477_v46 = vld [vmem:[%s2283_s9 + $0x8] sm:$0xff] }
 0x121   : > { %1197 = vmatprep.subr.bf16.mxu0 %v1626_v43 }
 0x124   : > { %1199 = vmatpush3.bf16.msra.mxu0 %v1198_v49 }
 0x125   : > { %1200 = vmatprep.subr.bf16.mxu0 %v1626_v43 }
 0x128   : > { %1202 = vmatpush3.bf16.msra.mxu0 %v1201_v52 }
 0x129   : > { %1203 = vmatprep.subr.bf16.mxu0 %v1626_v43 }
 0x12c   : > { %1205 = vmatpush3.bf16.msra.mxu0 %v1204_v55  ;;  %v1222_v55 = vpack.c.bf16 %v1761_v12, %v1756_v11 }
 0x12d   : > { %1206 = vmatprep.subr.bf16.mxu0 %v1626_v43 }
 0x130   : > { %1208 = vmatpush3.bf16.msra.mxu0 %v1207_v58 }
 0x131   : > { %1209 = vmatprep.subr.bf16.mxu0 %v1626_v43 }
 0x134   : > { %1211 = vmatpush3.bf16.msra.mxu0 %v1210_v61 }
 0x135   : > { %1212 = vmatprep.subr.bf16.mxu0 %v1626_v43 }
 0x138   : > { %1214 = vmatpush3.bf16.msra.mxu0 %v1213_v0 }
 0x139   : > { %1215 = vmatprep.subr.bf16.mxu0 %v1626_v43 }
 0x1ee   : > { %v271_v1 = vpop.f32.mrb[0].mxu0  ;;  %v1922_v2 = vpop.f32.mrb[0].mxu1 }
 0x1ef   : > { %346 = vrot.lane.b32.xlu0 %v271_v1, %s1627_s5  ;;  %v1122_v3 = vpop.f32.mrb[1].mxu0  ;;  %v1127_v4 = vpop.f32.mrb[1].mxu1  ;;  %v713_v37 = vrot.slane %v1922_v2, %v1980_v60 }
 0x1f3   : > { %350 = vrot.lane.b32.xlu0 %v1922_v2, %s1628_s6 }
 0x261   : > { %v347_v5 = vpop.permute.xlu0 %346 }
 0x262   : > { %v353_v6 = vsel %vm90_vm1, %v1589_v32, %v347_v5  ;;  %v1630_v5 = vmov 0  }
 0x263   : > { %1388 = vset.pattern.permute.xlu0 %v1630_v5  ;;  %1389 = vset.pattern.permute.xlu1 %v1630_v5 }
 0x265   : > { %v351_v7 = vpop.permute.xlu0 %350 }
 0x266   : > { %v355_v9 = vsel %vm354_vm7, %v353_v6, %v351_v7 }
 0x267   : > { %v356_v18 = vadd.f32 %v1597_v34, %v355_v9 }
 0x269   : > { %v358_v19 = vsel %vm357_vm8, %v356_v18, %v1597_v34 }
 0x26a   : > { %1161 = vmatmul.mubr.f32.vlgmr.msra.gmra.mrb[2].mxu0 %v358_v19 }
 0x26b   : > { %1171 = vmatprep.mubr.msk.f32.mxu0 %vm1625_vm2, %v1624_v35 }
 0x33d   : > { %v442_v21 = vpop.f32.mrb[2].mxu0 }
 0x33e   : > { %v443_v23 = vadd.f32 %v442_v21, %v375_v20  ;;  %v1162_v24 = vpop.f32.mrb[3].mxu0 }
 0x340   : > { %1395 = vtanh.f32 %v443_v23  ;;  %v1064_v26 = vmul.f32 -1.442695, %v443_v23 }
 0x342   : > { %1397 = vpow2.f32 %v1064_v26 }
 0x34a   : > { %v1396_v25 = vpop.eup %1395 }
 0x34b   : > { %455 = vrot.lane.b32.xlu1 %v1396_v25, %s1628_s6 }
 0x34c   : > { %v1398_v36 = vpop.eup %1397 }
 0x34d   : > { %v449_v38 = vadd.f32 1.0, %v1398_v36 }
 0x34f   : > { %1399 = vrcp.f32 %v449_v38 }
 0x359   : > { %v1400_v34 = vpop.eup %1399 }
 0x35a   : > { %v453_v41 = vmul.f32 %v1593_v33, %v1400_v34 }
 0x3bd   : > { %v456_v39 = vpop.permute.xlu1 %455 }
 0x3be   : > { %v458_v40 = vmul.f32 %v1400_v34, %v456_v39 }
 0x3c0   : > { %460 = vrot.lane.b32.xlu1 %v458_v40, %s1627_s5 }
 0x3c4   : > { %472 = vrot.lane.b32.xlu1 %v1589_v32, %s1629_s0  ;;  %v1216_v32 = vpack.c.bf16 %v477_v46, %v476_v45  ;;  %v715_v45 = vadd.s32 1, %v1577_v29 }
 0x3c6   : > { %1217 = vmatpush3.bf16.msra.mxu0 %v1216_v32  ;;  %vm716_vm12 = vcmp.lt.s32.totalorder %v715_v45, 8 }
 0x3c7   : > { %1218 = vmatprep.subr.bf16.mxu0 %v1626_v43 }
 0x432   : > { %v461_v42 = vpop.permute.xlu1 %460 }
 0x433   : > { %v1943_v33 = vadd.f32 %v461_v42, %v453_v41  }
 0x435   : > { %v2298_v44 = vmov %v1943_v33  ;;  %v1219_v33 = vpack.c.bf16 %v479_v48, %v478_v47 }
 0x436   : > { %1401 = vtanh.f32 %v2298_v44  ;;  %v473_v51 = vpop.permute.xlu1 %472 }
 0x437   : > { %1220 = vmatpush3.bf16.msra.mxu0 %v1219_v33  ;;  %v692_v33 = vstv %s1783_s25 }
 0x438   : > { %1221 = vmatprep.subr.bf16.mxu0 %v1626_v43 }
 0x440   : > { %v1402_v49 = vpop.eup %1401 }
 0x441   : > { %466 = vrot.lane.b32.xlu0 %v1402_v49, %s1628_s6 }
 0x4b3   : > { %v467_v50 = vpop.permute.xlu0 %466 }
 0x4b4   : > { %v1961_v52 = vmul.f32 %v1400_v34, %v467_v50  ;;  %v717_v50 = vsel %vm716_vm12, %v715_v45, 8 }
 0x4b6   : > { %v1965_v34 = vsel %vm357_vm8, %v356_v18, %v1961_v52   ;;  %v475_v54 = vadd.f32 %v473_v51, %v1961_v52 }
 0x4b7   : > { %v2299_v53 = vmov %v1965_v34 }
 0x4b8   : > { %481 = vrot.lane.b32.xlu0 %v475_v54, %s1627_s5 }
 0x52a   : > { %v482_v56 = vpop.permute.xlu0 %481 }
 0x52b   : > { %1172 = vmatmul.mubr.msk.f32.vlgmr.msra.gmra.mrb[4].mxu0 %vm90_vm1, %v482_v56 }
 0x52c   : > { %1223 = vmatpush3.bf16.msra.mxu0 %v1222_v55  ;;  %1182 = vmatprep.mubr.msk.f32.mxu0 %vm1625_vm2, %v1624_v35  ;;  %v1067_v35 = vld [vmem:[%s2284_s10] ss:$0 sm:$0xff] }
 0x52d   : > { %1224 = vmatprep.subr.bf16.mxu0 %v1626_v43  ;;  %v1069_v55 = vld [vmem:[%s2285_s11] ss:$0 sm:$0xff] }
 0x530   : > { %1226 = vmatpush3.bf16.msra.mxu0 %v1225_v57  ;;  %v708_v57 = vrot.slane %v1961_v52, %v1980_v60 }
 0x533   : > { %1183 = vmatmul.mubr.msk.f32.vlgmr.msra.gmra.mrb[6].mxu0 %vm90_vm1, %v1788_v22 }
 0x5fe   : > { %v551_v58 = vpop.f32.mrb[4].mxu0 }
 0x5ff   : > { %v1173_v59 = vpop.f32.mrb[5].mxu0  ;;  %v558_v61 = vrot.slane %v551_v58, %v1980_v60 }
 0x606   : > { %v628_v62 = vpop.f32.mrb[6].mxu0 }
 0x607   : > { %v629_v63 = vadd.f32 %v628_v62, %v558_v61  ;;  %v1184_v0 = vpop.f32.mrb[7].mxu0 }
 0x609   : > { %1403 = vtanh.f32 %v629_v63 }
 0x613   : > { %v1404_v1 = vpop.eup %1403 }
 0x614   : > { %v640_v3 = vmul.f32 %v1404_v1, %v1067_v35 }
 0x616   : > { %v641_v4 = vsel %vm90_vm1, %v640_v3, 0.0 }
 0x617   : > { %642 = vadd.xlane.f32.xlu1 %v641_v4 }
 0x6a4   : > { %v643_v6 = vpop.xlane.xlu1 %642 }
 0x6a5   : > { %v645_v7 = vsel %vm644_vm9, %v643_v6, -1e+09 }
 0x6a6   : > { %v647_v9 = vsel %vm646_vm10, %v645_v7, -inf }
 0x6a7   : > { %v648_v18 = vrot.slane %v647_v9, 4 }
 0x6a9   : > { %v649_v19 = vmax.f32 %v647_v9, %v648_v18 }
 0x6ab   : > { %v650_v20 = vrot.slane %v649_v19, 2 }
 0x6ad   : > { %v651_v21 = vmax.f32 %v649_v19, %v650_v20 }
 0x6af   : > { %v652_v23 = vrot.slane %v651_v21, 1 }
 0x6b1   : > { %v653_v24 = vmax.f32 %v651_v21, %v652_v23 }
 0x6b3   : > { %v654_v25 = vsub.f32 %v645_v7, %v653_v24  ;;  %vm669_vm11 = vcmp.ge.f32.partialorder %v645_v7, %v653_v24 }
 0x6b4   : > { %v670_v26 = vsel %vm669_vm11, %v176_v15, 8.0 }
 0x6b5   : > { %v655_v36 = vmul.f32 1.442695, %v654_v25  ;;  %v671_v38 = vsel %vm646_vm10, %v670_v26, inf }
 0x6b6   : > { %v672_v34 = vrot.slane %v671_v38, 4 }
 0x6b7   : > { %1405 = vpow2.f32 %v655_v36 }
 0x6b8   : > { %v673_v39 = vmin.f32 %v671_v38, %v672_v34 }
 0x6ba   : > { %v674_v40 = vrot.slane %v673_v39, 2 }
 0x6bc   : > { %v675_v41 = vmin.f32 %v673_v39, %v674_v40 }
 0x6be   : > { %v676_v42 = vrot.slane %v675_v41, 1 }
 0x6c0   : > { %v677_v46 = vmin.f32 %v675_v41, %v676_v42 }
 0x6c1   : > { %v1406_v47 = vpop.eup %1405 }
 0x6c2   : > { %v1999_v32 = vsel %vm644_vm9, %v1406_v47, 0.0  ;;  %v1263_v48 = vtrunc.f32 %v677_v46 }
 0x6c4   : > { %v2002_v49 = vcvt.f32.s32 %v1263_v48 }
 0x6c6   : > { %vm691_vm13 = vcmp.ne.s32.totalorder %v2002_v49, 0  ;;  %vm693_vm14 = vcmp.ne.s32.totalorder %v2002_v49, %v692_v33 }
 0x6c7   : > { %vm694_vm0 = vmand %vm691_vm13, %vm693_vm14  ;;  %vm728_vm14 = vcmask 1048320  }
 0x6c8   : > { %vm2010_vm2 = vmand %vm694_vm0, %vm1854_vm3 }
 0x6c9   : > { %vm699_vm4 = vmand %vm2010_vm2, %vm696_vm15  ;;  %v2018_v29 = vsel %vm2010_vm2, %v717_v50, 0  }
 0x6ca   : > { %v700_v54 = vsel %vm699_vm4, 1, %v1630_v5  ;;  %v1068_v52 = vadd.s32 4294967295, %v2018_v29  ;;  %vm719_vm6 = vcmp.lt.s32.totalorder %v1751_v10, %v2018_v29 }
 0x6cb   : > { %702 = vperm.xlu0 %1388, %v700_v54  }
 0x6cc   : > { %vm721_vm5 = vcmp.eq.s32.totalorder %v1751_v10, %v1068_v52 }
 0x6cd   : > { %v722_v60 = vsel %vm721_vm5, 1, %v1630_v5 }
 0x6cf   : > { %751 = vrot.lane.b32.xlu0 %v1069_v55, %s1629_s0 }
 0x74a   : > { %v703_v56 = vpop.permute.xlu0 %702 }
 0x74b   : > { %vm704_vm3 = vcmp.eq.s32.totalorder %v703_v56, 1 }
 0x74c   : > { %v2030_v30 = vsel %vm704_vm3, %v713_v37, %v1581_v30   ;;  %v2034_v31 = vsel %vm704_vm3, %v708_v57, %v1585_v31  }
 0x74d   : > { %v798_v58 = vmul.f32 %v1069_v55, %v2030_v30 }
 0x74e   : > { %v752_v59 = vpop.permute.xlu0 %751 }
 0x74f   : > { %v754_v61 = vmul.f32 %v752_v59, %v2034_v31  ;;  %v799_v62 = vsel %vm90_vm1, %v798_v58, 0.0 }
 0x750   : > { %800 = vadd.xlane.f32.xlu1 %v799_v62 }
 0x751   : > { %756 = vrot.lane.b32.xlu0 %v754_v61, %s1627_s5 }
 0x7c3   : > { %v757_v2 = vpop.permute.xlu0 %756 }
 0x7c4   : > { %v759_v63 = vsel %vm90_vm1, %v757_v2, 0.0 }
 0x7c5   : > { %760 = vadd.xlane.f32.xlu0 %v759_v63 }
 0x7db   : > { %724 = vperm.xlu0 %1388, %v722_v60  }
 0x7dd   : > { %v801_v0 = vpop.xlane.xlu1 %800 }
 0x7de   : > { %v802_v35 = vsel %vm719_vm6, %v801_v0, -1e+09 }
 0x7df   : > { %v803_v1 = vsel %vm646_vm10, %v802_v35, -inf }
 0x7e0   : > { %v804_v3 = vrot.slane %v803_v1, 4 }
 0x7e2   : > { %v805_v4 = vmax.f32 %v803_v1, %v804_v3 }
 0x7e4   : > { %v806_v6 = vrot.slane %v805_v4, 2 }
 0x7e6   : > { %v807_v7 = vmax.f32 %v805_v4, %v806_v6 }
 0x7e8   : > { %v808_v9 = vrot.slane %v807_v7, 1 }
 0x7ea   : > { %v809_v18 = vmax.f32 %v807_v7, %v808_v9 }
 0x7ec   : > { %v810_v19 = vsub.f32 %v802_v35, %v809_v18 }
 0x7ee   : > { %v811_v20 = vmul.f32 1.442695, %v810_v19 }
 0x7f0   : > { %1407 = vpow2.f32 %v811_v20 }
 0x7fa   : > { %v1408_v34 = vpop.eup %1407 }
 0x7fb   : > { %v813_v46 = vsel %vm719_vm6, %v1408_v34, 0.0 }
 0x7fc   : > { %v814_v50 = vsel %vm646_vm10, %v813_v46, 0.0 }
 0x7fd   : > { %v815_v56 = vrot.slane %v814_v50, 4 }
 0x7ff   : > { %v816_v59 = vadd.f32 %v815_v56, %v814_v50  ;;  %v872_v50 = vld [vmem:[%s2286_s12 + $0x50] sm:$0xff]  ;;  %v875_v56 = vld [vmem:[%s2286_s12 + $0x68] sm:$0xff] }
 0x801   : > { %v817_v61 = vrot.slane %v816_v59, 2 }
 0x803   : > { %v818_v63 = vadd.f32 %v817_v61, %v816_v59  ;;  %v877_v59 = vld [vmem:[%s2286_s12 + $0x78] sm:$0xff] }
 0x805   : > { %v819_v35 = vrot.slane %v818_v63, 1 }
 0x807   : > { %v820_v4 = vadd.f32 %v819_v35, %v818_v63  ;;  %v679_v35 = vstv %s1601_s3  ;;  %s180_s3 = sadd.s32 1, %s1601_s3  }
 0x808   : > { %vm2144_vm13 = vcmp.eq.s32.totalorder %v1770_v14, %v679_v35  ;;  %p179_p12 = scmp.ge.s32.totalorder %s180_s3, %s1768_s20 }
 0x809   : > { %vm821_vm11 = vcmp.gt.f32.partialorder %v820_v4, 0.0 }
 0x852   : > { %v761_v21 = vpop.xlane.xlu0 %760 }
 0x853   : > { %v762_v23 = vsel %vm719_vm6, %v761_v21, -1e+09 }
 0x854   : > { %v763_v24 = vsel %vm646_vm10, %v762_v23, -inf }
 0x855   : > { %v764_v25 = vrot.slane %v763_v24, 4 }
 0x857   : > { %v765_v26 = vmax.f32 %v763_v24, %v764_v25  ;;  %v863_v24 = vld [vmem:[%s2286_s12 + $0x8] sm:$0xff]  ;;  %v864_v25 = vld [vmem:[%s2286_s12 + $0x10] sm:$0xff] }
 0x859   : > { %v766_v36 = vrot.slane %v765_v26, 2 }
 0x85a   : > { %v2053_v38 = vpop.permute.xlu0 %724 }
 0x85b   : > { %v767_v39 = vmax.f32 %v765_v26, %v766_v36  ;;  %vm726_vm9 = vcmp.eq.s32.totalorder %v2053_v38, 1  ;;  %v865_v36 = vld [vmem:[%s2286_s12 + $0x18] sm:$0xff] }
 0x85c   : > { %v736_v40 = vsel %vm726_vm9, %v2030_v30, 0.0  ;;  %v1231_v34 = vpack.c.bf16 %v865_v36, %v864_v25 }
 0x85d   : > { %v768_v41 = vrot.slane %v767_v39, 1  ;;  %v737_v42 = vsel %vm90_vm1, %v736_v40, 0.0  ;;  %v867_v40 = vld [vmem:[%s2286_s12 + $0x28] sm:$0xff] }
 0x85e   : > { %v738_v45 = vrot.slane %v737_v42, 4 }
 0x85f   : > { %v769_v47 = vmax.f32 %v767_v39, %v768_v41  ;;  %v866_v39 = vld [vmem:[%s2286_s12 + $0x20] sm:$0xff] }
 0x860   : > { %v739_v48 = vadd.f32 %v738_v45, %v737_v42  ;;  %v1234_v41 = vpack.c.bf16 %v867_v40, %v866_v39  ;;  %v868_v42 = vld [vmem:[%s2286_s12 + $0x30] sm:$0xff]  ;;  %v869_v45 = vld [vmem:[%s2286_s12 + $0x38] sm:$0xff] }
 0x861   : > { %v770_v33 = vsub.f32 %v762_v23, %v769_v47  ;;  %v862_v23 = vld [vmem:[%s2286_s12] sm:$0xff] }
 0x862   : > { %v740_v54 = vrot.slane %v739_v48, 2  ;;  %v1228_v26 = vpack.c.bf16 %v863_v24, %v862_v23  ;;  %v870_v47 = vld [vmem:[%s2286_s12 + $0x40] sm:$0xff] }
 0x863   : > { %v771_v55 = vmul.f32 1.442695, %v770_v33 }
 0x864   : > { %v741_v37 = vadd.f32 %v740_v54, %v739_v48  ;;  %1229 = vmatpush1.bf16.msra.mxu1 %v1228_v26  ;;  %v871_v48 = vld [vmem:[%s2286_s12 + $0x48] sm:$0xff]  ;;  %v873_v54 = vld [vmem:[%s2286_s12 + $0x58] sm:$0xff] }
 0x865   : > { %1409 = vpow2.f32 %v771_v55  ;;  %1230 = vmatprep.subr.bf16.mxu1 %v1626_v43  ;;  %v1240_v33 = vpack.c.bf16 %v871_v48, %v870_v47  ;;  %v1243_v55 = vpack.c.bf16 %v873_v54, %v872_v50  ;;  %v884_v47 = vld [vmem:[%s2286_s12 + $0xb0] sm:$0xff]  ;;  %v885_v48 = vld [vmem:[%s2286_s12 + $0xb8] sm:$0xff] }
 0x866   : > { %v742_v57 = vrot.slane %v741_v37, 1  ;;  %v1261_v54 = vpack.c.bf16 %v885_v48, %v884_v47 }
 0x868   : > { %v743_v58 = vadd.f32 %v742_v57, %v741_v37  ;;  %1232 = vmatpush1.bf16.msra.mxu1 %v1231_v34  ;;  %v874_v37 = vld [vmem:[%s2286_s12 + $0x60] sm:$0xff]  ;;  %v883_v34 = vld [vmem:[%s2286_s12 + $0xa8] sm:$0xff] }
 0x869   : > { %1233 = vmatprep.subr.bf16.mxu1 %v1626_v43  ;;  %v1246_v57 = vpack.c.bf16 %v875_v56, %v874_v37 }
 0x86a   : > { %855 = vrot.lane.b32.xlu0 %v743_v58, %s1627_s5  ;;  %v876_v58 = vld [vmem:[%s2286_s12 + $0x70] sm:$0xff] }
 0x86b   : > { %v1249_v61 = vpack.c.bf16 %v877_v59, %v876_v58 }
 0x86c   : > { %1235 = vmatpush1.bf16.msra.mxu1 %v1234_v41 }
 0x86d   : > { %1236 = vmatprep.subr.bf16.mxu1 %v1626_v43 }
 0x86e   : > { %682 = vperm.xlu0 %1388, %v2002_v49   ;;  %v822_v49 = vsel %vm821_vm11, %v820_v4, 1.0 }
 0x86f   : > { %v1410_v62 = vpop.eup %1409 }
 0x870   : > { %v773_v2 = vsel %vm719_vm6, %v1410_v62, 0.0  ;;  %v878_v62 = vld [vmem:[%s2286_s12 + $0x80] sm:$0xff] }
 0x871   : > { %v774_v52 = vsel %vm646_vm10, %v773_v2, 0.0 }
 0x872   : > { %v775_v60 = vrot.slane %v774_v52, 4 }
 0x874   : > { %v776_v0 = vadd.f32 %v775_v60, %v774_v52  ;;  %v880_v52 = vld [vmem:[%s2286_s12 + $0x90] sm:$0xff]  ;;  %v881_v60 = vld [vmem:[%s2286_s12 + $0x98] sm:$0xff] }
 0x876   : > { %v777_v1 = vrot.slane %v776_v0, 2 }
 0x878   : > { %v778_v3 = vadd.f32 %v777_v1, %v776_v0  ;;  %v1255_v0 = vpack.c.bf16 %v881_v60, %v880_v52 }
 0x87a   : > { %v779_v6 = vrot.slane %v778_v3, 1 }
 0x87c   : > { %v780_v7 = vadd.f32 %v779_v6, %v778_v3 }
 0x87e   : > { %vm781_vm12 = vcmp.gt.f32.partialorder %v780_v7, 0.0 }
 0x87f   : > { %v782_v9 = vsel %vm781_vm12, %v780_v7, 1.0  ;;  %v658_v7 = vsel %vm646_vm10, %v1999_v32, 0.0 }
 0x880   : > { %1411 = vrcp.f32 %v782_v9  ;;  %v659_v9 = vrot.slane %v658_v7, 4 }
 0x881   : > { %1413 = vrcp.f32 %v822_v49 }
 0x882   : > { %v660_v49 = vadd.f32 %v659_v9, %v658_v7  ;;  %v697_v9 = vsel %vm2010_vm2, 1, %v1630_v5 }
 0x88a   : > { %v1412_v18 = vpop.eup %1411 }
 0x88b   : > { %v784_v19 = vmul.f32 %v1412_v18, %v773_v2  ;;  %v1414_v20 = vpop.eup %1413  ;;  %v879_v2 = vld [vmem:[%s2286_s12 + $0x88] sm:$0xff]  ;;  %v727_v18 = vsel %vm726_vm9, %v2034_v31, 0.0 }
 0x88c   : > { %v824_v21 = vmul.f32 %v1414_v20, %v813_v46  ;;  %v1237_v46 = vpack.c.bf16 %v869_v45, %v868_v42  ;;  %v1252_v63 = vpack.c.bf16 %v879_v2, %v878_v62  ;;  %v729_v20 = vsel %vm728_vm14, %v727_v18, 0.0 }
 0x88d   : > { %787 = vperm.xlu1 %1389, %v784_v19   ;;  %v661_v19 = vrot.slane %v660_v49, 2 }
 0x88e   : > { %1238 = vmatpush1.bf16.msra.mxu1 %v1237_v46 }
 0x88f   : > { %1239 = vmatprep.subr.bf16.mxu1 %v1626_v43  ;;  %v662_v23 = vadd.f32 %v661_v19, %v660_v49 }
 0x891   : > { %827 = vperm.xlu1 %1389, %v824_v21   ;;  %v730_v21 = vrot.slane %v729_v20, 4  ;;  %v663_v25 = vrot.slane %v662_v23, 1 }
 0x892   : > { %1241 = vmatpush1.bf16.msra.mxu1 %v1240_v33 }
 0x893   : > { %1242 = vmatprep.subr.bf16.mxu1 %v1626_v43  ;;  %v731_v24 = vadd.f32 %v730_v21, %v729_v20  ;;  %v664_v40 = vadd.f32 %v663_v25, %v662_v23 }
 0x895   : > { %839 = vrot.lane.b32.xlu1 %v2034_v31, %s1627_s5  ;;  %v732_v39 = vrot.slane %v731_v24, 2  ;;  %vm665_vm10 = vcmp.gt.f32.partialorder %v664_v40, 0.0 }
 0x896   : > { %1244 = vmatpush1.bf16.msra.mxu1 %v1243_v55 }
 0x897   : > { %1245 = vmatprep.subr.bf16.mxu1 %v1626_v43  ;;  %v733_v33 = vadd.f32 %v732_v39, %v731_v24 }
 0x899   : > { %v734_v58 = vrot.slane %v733_v33, 1 }
 0x89a   : > { %1247 = vmatpush1.bf16.msra.mxu1 %v1246_v57  ;;  %v666_v57 = vsel %vm665_vm10, %v664_v40, 1.0 }
 0x89b   : > { %1248 = vmatprep.subr.bf16.mxu1 %v1626_v43  ;;  %1415 = vrcp.f32 %v666_v57  ;;  %v735_v52 = vadd.f32 %v734_v58, %v733_v33  ;;  %v2307_v33 = vmov %v2298_v44 }
 0x89e   : > { %1250 = vmatpush1.bf16.msra.mxu1 %v1249_v61 }
 0x89f   : > { %1251 = vmatprep.subr.bf16.mxu1 %v1626_v43 }
 0x8a2   : > { %1253 = vmatpush1.bf16.msra.mxu1 %v1252_v63 }
 0x8a3   : > { %1254 = vmatprep.subr.bf16.mxu1 %v1626_v43 }
 0x8a5   : > { %v1416_v7 = vpop.eup %1415 }
 0x8a6   : > { %1256 = vmatpush1.bf16.msra.mxu1 %v1255_v0  ;;  %v1390_v0 = vpack.i.bf16 %v2030_v30, %v735_v52  ;;  %v668_v49 = vmul.f32 %v1416_v7, %v1999_v32  ;;  %v886_v32 = vld [vmem:[%s2287_s13] sm:$0x1] }
 0x8a7   : > { %1257 = vmatprep.subr.bf16.mxu1 %v1626_v43 }
 0x8dc   : > { %v856_v1 = vpop.permute.xlu0 %855 }
 0x8ed   : > { %v683_v4 = vpop.permute.xlu0 %682 }
 0x8ee   : > { %v2151_v28 = vsel %vm2144_vm13, %v683_v4, %v1573_v28  }
 0x8ef   : > { %v2304_v6 = vmov %v2151_v28  ;;  %v882_v28 = vld [vmem:[%s2286_s12 + $0xa0] sm:$0xff] }
 0x8f0   : > { %v1258_v38 = vpack.c.bf16 %v883_v34, %v882_v28 }
 0x8f2   : > { %1259 = vmatpush1.bf16.msra.mxu1 %v1258_v38 }
 0x8f3   : > { %1260 = vmatprep.subr.bf16.mxu1 %v1626_v43 }
 0x8f6   : > { %1262 = vmatpush1.bf16.msra.mxu1 %v1261_v54 }
 0x90c   : > { %v788_v26 = vpop.permute.xlu1 %787 }
 0x90d   : > { %v790_v36 = vmul.f32 %v788_v26, %v2034_v31 }
 0x90f   : > { %v791_v41 = vsel %vm728_vm14, %v790_v36, 0.0 }
 0x910   : > { %v792_v42 = vrot.slane %v791_v41, 4  ;;  %v828_v45 = vpop.permute.xlu1 %827 }
 0x911   : > { %v830_v46 = vmul.f32 %v828_v45, %v2030_v30 }
 0x912   : > { %v793_v50 = vadd.f32 %v792_v42, %v791_v41 }
 0x913   : > { %v831_v55 = vsel %vm90_vm1, %v830_v46, 0.0 }
 0x914   : > { %v794_v37 = vrot.slane %v793_v50, 2  ;;  %v832_v56 = vrot.slane %v831_v55, 4  ;;  %v840_v18 = vpop.permute.xlu1 %839 }
 0x916   : > { %v795_v43 = vadd.f32 %v794_v37, %v793_v50  ;;  %v833_v59 = vadd.f32 %v832_v56, %v831_v55 }
 0x918   : > { %v834_v61 = vrot.slane %v833_v59, 2  ;;  %v796_v62 = vrot.slane %v795_v43, 1 }
 0x91a   : > { %v835_v2 = vadd.f32 %v834_v61, %v833_v59  ;;  %v797_v63 = vadd.f32 %v796_v62, %v795_v43 }
 0x91c   : > { %v836_v60 = vrot.slane %v835_v2, 1  ;;  %843 = vrot.lane.b32.xlu1 %v797_v63, %s1628_s6 }
 0x91e   : > { %v837_v35 = vadd.f32 %v836_v60, %v835_v2 }
 0x920   : > { %1391 = vrot.lane.b32.xlu1 %v1390_v0, %s1629_s0  ;;  %v861_v4 = vsel %vm90_vm1, %v837_v35, %v856_v1 }
 0x921   : > { %1070 = vmatprep.mubr.msk.f32.mxu1 %vm354_vm7, %v861_v4 }
 0x924   : > { %962 = vperm.xlu1 %1389, %v697_v9  }
 0x928   : > { %687 = vperm.xlu1 %1389, %v668_v49  }
 0x98e   : > { %v844_v19 = vpop.permute.xlu1 %843 }
 0x98f   : > { %v858_v24 = vsel %vm90_vm1, %v840_v18, %v844_v19 }
 0x992   : > { %v1392_v20 = vpop.permute.xlu1 %1391 }
 0x993   : > { %v1394_v21 = vunpack.i.h.bf16 %v1392_v20  ;;  %v1393_v23 = vunpack.i.l.bf16 %v1392_v20 }
 0x995   : > { %v859_v1 = vsel %vm354_vm7, %v858_v24, %v1393_v23  ;;  %v2310_v24 = vmov (%p179_p12), %v2304_v6 }
 0x996   : > { %v860_v25 = vsel %vm357_vm8, %v859_v1, %v1394_v21 }
 0x997   : > { %955 = vmatmul.mubr.f32.vlgmr.msra.gmra.mrb[2].mxu1 %v860_v25  ;;  %v2311_v25 = vmov (%p179_p12), %v2298_v44 }
 0x9a3   : > { %v963_v26 = vpop.permute.xlu1 %962 }
 0x9a4   : > { %vm964_vm15 = vcmp.eq.s32.totalorder %v963_v26, 1  ;;  %v2312_v26 = vmov (%p179_p12), %v2299_v53 }
 0x9a7   : > { %v688_v36 = vpop.permute.xlu1 %687 }
 0x9a8   : > { %v690_v5 = vsel %vm2144_vm13, %v688_v36, %v1569_v27  }
 0x9a9   : > { %v2305_v27 = vmov %v690_v5  ;;  %v2309_v23 = vmov (%p179_p12), %v690_v5 }
 0xa69   :  { %182 = sbr.rel (!%p179_p12) target bundleno = 273 (0x111), region = 115 }
 0xa6a   : > { %v956_v51 = vpop.f32.mrb[2].mxu1 }
 0xa6b   : > { %v957_v28 = vadd.f32 %v956_v51, %v886_v32  ;;  %v958_v34 = vpop.f32.mrb[3].mxu1 }
 0xa6c   : > { %v2308_v34 = vmov %v2299_v53 }
 0xa6d   : > { %v960_v39 = vmax.f32 %v957_v28, 0.0  ;;  %v2306_v28 = vmov %v2304_v6 }
 0xa6f   : > { %v965_v32 = vsel %vm964_vm15, %v960_v39, 0.0  }
 0xa70 PF:  { %vm966_vm1 = vcmask 57344   ;;  %vm968_vm7 = vcmask 64512   ;;  %s1631_s7 = smov 32   ;;  %s1632_s10 = smov [#allocation7]   ;;  %v1617_v26 = vphi %v1797_v26, %v2312_v26   ;;  %v1613_v25 = vphi %v1795_v25, %v2311_v25   ;;  %v1609_v24 = vphi %v1793_v24, %v2310_v24   ;;  %v1605_v23 = vphi %v1791_v23, %v2309_v23  }
 0xa71   :  { %971 = vrot.lane.b32.xlu0 %v1617_v26, %s1631_s7  ;;  %967 = vst.msk [vmem:[#allocation7] sm:$0x1] %vm966_vm1, %v1609_v24  ;;  %s987_s11 = sshll.u32 %s1632_s10, 4  ;;  %s988_s11 = int_to_ptr.vmem [resolvable:$true] %s987_s11 }
 0xa72   :  { %969 = vst.msk [vmem:[%s2289_s15] sm:$0xff] %vm968_vm7, %v1605_v23  ;;  %s1441_s12 = scalar_lea.vmem %s988_s11, 16  ;;  %s1445_s13 = scalar_lea.vmem %s988_s11, 32 }
 0xa73   :  { %p1442_p13 = scmp.ne.s32.totalorder %s988_s11, %s1441_s12  ;;  %p1446_p0 = scmp.lt.s32.totalorder %s988_s11, %s988_s11 }
 0xa74   :  { %p1447_p1 = scmp.lt.s32.totalorder %s1445_s13, %s1441_s12 }
 0xa76   :  { %p1448_p2 = por %p1447_p1, %p1446_p0 }
 0xa78   :  { %p1449_p3 = pnand %p1448_p2, %p1442_p13 }
 0xa7a   :  { %1452 = shalt.err (!%p1449_p3)
}
 0xa7b   :  { %s1453_s3 = scalar_lea.hbm %s2288_s14, 16 }
 0xa7c   :  { %p1454_p4 = scmp.ne.s32.totalorder %s2288_s14, %s1453_s3  ;;  %p1457_p5 = scmp.lt.u32.totalorder %s1453_s3, %s2288_s14 }
 0xa7e   :  { %p1459_p6 = pnand %p1457_p5, %p1454_p4 }
 0xa80   :  { %1462 = shalt.err (!%p1459_p6)
}
 0xa81   :  { %990 = dma.vmem_to_hbm [thread:$0]  %s988_s11, 16, %s2288_s14, [#allocation3]   ;;  %vm974_vm8 = vcmask 253952  }
 0xa82   :  { %s1633_s5 = smov 96   ;;  %s1634_s21 = smov [#allocation8]  }
 0xa83   :  { %977 = vrot.lane.b32.xlu0 %v1613_v25, %s1633_s5  ;;  %s999_s22 = sshll.u32 %s1634_s21, 4  ;;  %s1635_s23 = smov [#allocation10]   ;;  %s1000_s22 = int_to_ptr.vmem [resolvable:$true] %s999_s22 }
 0xa84   :  { %s1009_s24 = sshll.u32 %s1635_s23, 4  ;;  %s1463_s26 = scalar_lea.vmem %s1000_s22, 16  ;;  %s1010_s24 = int_to_ptr.vmem [resolvable:$true] %s1009_s24 }
 0xa85   :  { %p1464_p7 = scmp.ne.s32.totalorder %s1000_s22, %s1463_s26  ;;  %s1467_s27 = scalar_lea.vmem %s1000_s22, 32 }
 0xa86   :  { %p1468_p8 = scmp.lt.s32.totalorder %s1000_s22, %s1000_s22  ;;  %p1469_p9 = scmp.lt.s32.totalorder %s1467_s27, %s1463_s26 }
 0xa88   :  { %p1470_p10 = por %p1469_p9, %p1468_p8 }
 0xa8a   :  { %p1471_p11 = pnand %p1470_p10, %p1464_p7 }
 0xae3   :  { %v972_v8 = vpop.permute.xlu0 %971 }
 0xae4   :  { %975 = vst.msk [vmem:[#allocation8] sm:$0x1] %vm974_vm8, %v972_v8 }
 0xae5   :  { %1474 = shalt.err (!%p1471_p11)
}
 0xae6   :  { %s1475_s29 = scalar_lea.hbm %s2290_s16, 16 }
 0xae7   :  { %p1476_p12 = scmp.ne.s32.totalorder %s2290_s16, %s1475_s29  ;;  %p1479_p13 = scmp.lt.u32.totalorder %s1475_s29, %s2290_s16 }
 0xae9   :  { %p1481_p0 = pnand %p1479_p13, %p1476_p12 }
 0xaeb   :  { %1484 = shalt.err (!%p1481_p0)
}
 0xaec   :  { %1002 = dma.vmem_to_hbm [thread:$0]  %s1000_s22, 16, %s2290_s16, [#allocation9]  }
 0xaed   :  { %s1485_s10 = scalar_lea.vmem %s1010_s24, 16  ;;  %s1489_s11 = scalar_lea.vmem %s1010_s24, 32 }
 0xaee   :  { %p1486_p1 = scmp.ne.s32.totalorder %s1010_s24, %s1485_s10  ;;  %p1490_p2 = scmp.lt.s32.totalorder %s1010_s24, %s1010_s24 }
 0xaef   :  { %p1491_p3 = scmp.lt.s32.totalorder %s1489_s11, %s1485_s10 }
 0xaf1   :  { %p1492_p4 = por %p1491_p3, %p1490_p2 }
 0xaf3   :  { %p1493_p5 = pnand %p1492_p4, %p1486_p1 }
 0xaf5   :  { %v978_v10 = vpop.permute.xlu0 %977 }
 0xaf6   :  { %980 = vst.msk [vmem:[#allocation10] sm:$0x1] %vm974_vm8, %v978_v10 }
 0xaf7   :  { %1496 = shalt.err (!%p1493_p5)
}
 0xaf8   :  { %s1497_s20 = scalar_lea.hbm %s2291_s17, 16 }
 0xaf9   :  { %p1498_p6 = scmp.ne.s32.totalorder %s2291_s17, %s1497_s20  ;;  %p1501_p7 = scmp.lt.u32.totalorder %s1497_s20, %s2291_s17 }
 0xafb   :  { %p1503_p8 = pnand %p1501_p7, %p1498_p6 }
 0xafd   :  { %1506 = shalt.err (!%p1503_p8)
}
 0xafe   :  { %1012 = dma.vmem_to_hbm [thread:$0]  %s1010_s24, 16, %s2291_s17, [#allocation9]  }
 0xaff   :  { %1563 = dma.done.wait [#allocation3], 16  }
 0xb00   :  { %1564 = vsyncadd [#allocation3], 4294967280 }
 0xb01   :  { %1565 = dma.done.wait [#allocation9], 32  }
 0xb02   :  { %1566 = vsyncadd [#allocation9], 4294967264 }
 0xb03   :  { %1024 = vsyncpa [#allocation3], 1 }
 0xb04   :  { %1025 = vsyncpa [#allocation9], 1 }
 0xb05   :  { %1026 = vsyncpa [#allocation4], 1 }
 0xb06   :  { %1027 = vsyncpa [#allocation6], 1 }

</bundles_post_ra>
